<compile_context>
chip_gen: v5e
topology: v5e:2x2
jax: 0.10.0
libtpu: 0.0.40
codegen_flags: <defaults>
</compile_context>

<pallas_src>
import jax
import jax.numpy as jnp
from jax import lax
from jax.experimental import pallas as pl
from jax.experimental.pallas import tpu as pltpu

# ---------------- small, module-consistent config ----------------
B = 2      # batch (power of two -> bitwise batch-id trick in the attention mask)
S = 8      # source_length == encoder_length
T = 8      # decoder_length
V = 12     # vocab_size
H = 32     # hidden_size
M = 32     # mlp_hidden_size
G4 = 4 * H           # 128
LANES = 128
EPS = 1e-12          # F.normalize eps

assert B & (B - 1) == 0, "B must be a power of two"

# ---------------- packed parameter slab layout (rows of a (552, 128) f32 array) ----------
ROW_ENC_WHH = 0                          # (H, 4H)     gate order (i, f, o, g)
ROW_DEC_WHH = ROW_ENC_WHH + H            # (H, 4H)
ROW_ATT_CAT = ROW_DEC_WHH + H            # (2H, 128)   rows 0:H -> Wm (mix), H:2H -> Wo (h); cols >=H zero
ROW_OUT_W = ROW_ATT_CAT + 2 * H          # (128, 128)  rows >=H zero, cols >=V zero
ROW_MLP_W0 = ROW_OUT_W + LANES           # (H, 128)    cols >=M zero
ROW_MLP_W1 = ROW_MLP_W0 + H              # (128, 128)  rows >=M zero, cols >=M zero
ROW_REG_W = ROW_MLP_W1 + LANES           # (128, 128)  rows >=M zero, cols >=1 zero
ROW_BIAS = ROW_REG_W + LANES             # +0 attn_b, +1 out_b, +2 mlp_b0, +3 mlp_b1, +4 reg_b
SLAB_ROWS = ROW_BIAS + 8                 # 552 (multiple of 8)


# ---------------- in-kernel helpers ----------------
def _l2_normalize(x):
    nrm = jnp.sqrt(jnp.sum(x * x, axis=-1, keepdims=True))
    return x / jnp.maximum(nrm, EPS)


def _lstm_step(xg, h, c, whh):
    # xg already contains x @ W_ih + (b_ih + b_hh); gate column order is (i, f, o, g).
    gates = xg + jnp.dot(h, whh, preferred_element_type=jnp.float32)   # (B, 4H)
    ifo = jax.nn.sigmoid(gates[:, :3 * H])      # single sigmoid over contiguous i|f|o
    g = jnp.tanh(gates[:, 3 * H:])              # single tanh over g
    c_new = ifo[:, H:2 * H] * c + ifo[:, :H] * g
    h_new = ifo[:, 2 * H:] * jnp.tanh(c_new)
    return h_new, c_new


# ---------------- fused NAO kernel ----------------
def nao_kernel(xg_ref,       # (S*B, 4H) precomputed encoder gate inputs, row = t*B + b
               yg_ref,       # (T*B, 4H) precomputed decoder gate inputs (teacher forcing)
               wp_ref,       # (SLAB_ROWS, 128) packed weights / biases
               pred_ref,     # (B, 1)        predict_value
               logp_ref,     # (T*B, 128)    log_softmax (cols >= V are junk, sliced off outside)
               sym_ref,      # (T*B, 1)      greedy argmax symbols (int32)
               henc_scr,     # (S*B, H) VMEM: raw encoder hidden states
               hdec_scr):    # (T*B, H) VMEM: raw decoder hidden states
    f32 = jnp.float32
    enc_whh = wp_ref[ROW_ENC_WHH:ROW_ENC_WHH + H, :]
    dec_whh = wp_ref[ROW_DEC_WHH:ROW_DEC_WHH + H, :]

    # ---- encoder recurrence: ONLY the LSTM cell + raw-h store stay inside the loop ----
    h = jnp.zeros((B, H), f32)
    c = jnp.zeros((B, H), f32)
    for t in range(S):
        h, c = _lstm_step(xg_ref[pl.ds(t * B, B), :], h, c, enc_whh)
        henc_scr[pl.ds(t * B, B), :] = h

    # ---- batched encoder post-processing (off the serial path) ----
    ctx = _l2_normalize(henc_scr[...])                      # (S*B, H) encoder_outputs
    rid = lax.broadcasted_iota(jnp.int32, (S * B, 1), 0)
    rows = []
    for b in range(B):                                      # per-batch mean over time
        sel = jnp.bitwise_and(rid, B - 1) == b
        rows.append(jnp.sum(jnp.where(sel, ctx, 0.0), axis=0, keepdims=True) * (1.0 / S))
    arch_emb = _l2_normalize(jnp.concatenate(rows, axis=0))  # (B, H)

    # ---- value predictor: RHS kept 128 lanes wide (zero-padded) -> no operand lane-slices ----
    w0 = wp_ref[ROW_MLP_W0:ROW_MLP_W0 + H, :]
    w1 = wp_ref[ROW_MLP_W1:ROW_MLP_W1 + LANES, :]
    wr = wp_ref[ROW_REG_W:ROW_REG_W + LANES, :]
    b0 = wp_ref[ROW_BIAS + 2:ROW_BIAS + 3, :]
    b1 = wp_ref[ROW_BIAS + 3:ROW_BIAS + 4, :]
    br = wp_ref[ROW_BIAS + 4:ROW_BIAS + 5, :]
    z = jnp.maximum(jnp.dot(arch_emb, w0, preferred_element_type=f32) + b0, 0.0)  # (B,128), cols>=M == 0
    z = jnp.maximum(jnp.dot(z, w1, preferred_element_type=f32) + b1, 0.0)         # (B,128), cols>=M == 0
    pv = jax.nn.sigmoid(jnp.dot(z, wr, preferred_element_type=f32) + br)          # (B,128)
    pred_ref[...] = pv[:, :1]

    # ---- decoder recurrence: ONLY the LSTM cell + raw-h store stay inside the loop ----
    h = arch_emb
    c = arch_emb
    for t in range(T):
        h, c = _lstm_step(yg_ref[pl.ds(t * B, B), :], h, c, dec_whh)
        hdec_scr[pl.ds(t * B, B), :] = h

    # ---- batched decoder post-processing (attention + projections + log_softmax + argmax) ----
    dec_h = hdec_scr[...]                                    # (T*B, H)
    w_cat = wp_ref[ROW_ATT_CAT:ROW_ATT_CAT + 2 * H, :]
    w_out = wp_ref[ROW_OUT_W:ROW_OUT_W + LANES, :]
    b_att = wp_ref[ROW_BIAS + 0:ROW_BIAS + 1, :]
    b_out = wp_ref[ROW_BIAS + 1:ROW_BIAS + 2, :]

    # all-pairs scores on the MXU; mask out rows/cols whose batch ids differ
    scores = lax.dot_general(dec_h, ctx, (((1,), (1,)), ((), ())),
                             preferred_element_type=f32)     # (T*B, S*B)
    ri = lax.broadcasted_iota(jnp.int32, (T * B, S * B), 0)
    ci = lax.broadcasted_iota(jnp.int32, (T * B, S * B), 1)
    same_b = jnp.bitwise_and(ri, B - 1) == jnp.bitwise_and(ci, B - 1)
    scores = jnp.where(same_b, scores, -jnp.inf)
    smax = jnp.max(scores, axis=-1, keepdims=True)
    e = jnp.exp(scores - smax)
    attn = e / jnp.sum(e, axis=-1, keepdims=True)            # cross-batch entries are exactly 0
    mix = jnp.dot(attn, ctx, preferred_element_type=f32)     # (T*B, H)

    # tanh(Linear(cat([mix, output]))) with a 128-lane padded weight (cols >= H are zero)
    att_in = jnp.concatenate([mix, dec_h], axis=-1)          # (T*B, 2H)
    att_out = jnp.tanh(jnp.dot(att_in, w_cat, preferred_element_type=f32) + b_att)  # cols>=H == 0
    logits = jnp.dot(att_out, w_out, preferred_element_type=f32) + b_out            # cols>=V == 0

    # vectorized log_softmax over the first V lanes + greedy argmax, for all T*B rows at once
    lane_i = lax.broadcasted_iota(jnp.int32, (T * B, LANES), 1)
    lane_f = lane_i.astype(f32)
    masked = jnp.where(lane_i < V, logits, -jnp.inf)
    lmax = jnp.max(masked, axis=-1, keepdims=True)
    lse = lmax + jnp.log(jnp.sum(jnp.exp(masked - lmax), axis=-1, keepdims=True))
    logp_ref[...] = logits - lse                             # lane-dense single store
    sym = jnp.min(jnp.where(masked >= lmax, lane_f, float(LANES)), axis=-1, keepdims=True)
    sym_ref[...] = sym.astype(jnp.int32)


# ---------------- pallas_call wrapper ----------------
_COST = pl.CostEstimate(
    flops=(2 * (S + T) * B * H * G4                      # recurrent h @ Whh
           + 2 * (T * B) * H * (S * B) * 2               # attention scores + mix
           + 2 * (T * B) * (2 * H) * LANES               # attention combine
           + 2 * (T * B) * LANES * LANES                 # output projection (padded)
           + 2 * B * (H * LANES + 2 * LANES * LANES)),   # MLP + regressor (padded)
    transcendentals=((S + T) * B * G4 + (T * B) * (S * B + 2 * LANES) + B),
    bytes_accessed=4 * ((S + T) * B * G4 + SLAB_ROWS * LANES + B
                        + (T * B) * LANES + T * B),
)


def _nao_call(xg, yg, wp):
    # Single-shot kernel (everything VMEM resident).  For v7x throughput on many archs,
    # add a leading "parallel" grid axis over independent NAO evaluations.
    return pl.pallas_call(
        nao_kernel,
        grid=(1,),
        in_specs=[
            pl.BlockSpec((S * B, G4), lambda i: (0, 0)),
            pl.BlockSpec((T * B, G4), lambda i: (0, 0)),
            pl.BlockSpec((SLAB_ROWS, LANES), lambda i: (0, 0)),
        ],
        out_specs=(
            pl.BlockSpec((B, 1), lambda i: (0, 0)),
            pl.BlockSpec((T * B, LANES), lambda i: (0, 0)),
            pl.BlockSpec((T * B, 1), lambda i: (0, 0)),
        ),
        out_shape=(
            jax.ShapeDtypeStruct((B, 1), jnp.float32),
            jax.ShapeDtypeStruct((T * B, LANES), jnp.float32),
            jax.ShapeDtypeStruct((T * B, 1), jnp.int32),
        ),
        scratch_shapes=[
            pltpu.VMEM((S * B, H), jnp.float32),   # raw encoder hidden states
            pltpu.VMEM((T * B, H), jnp.float32),   # raw decoder hidden states
        ],
        compiler_params=pltpu.CompilerParams(dimension_semantics=("arbitrary",)),
        cost_estimate=_COST,
    )(xg, yg, wp)


@jax.jit
def nao_forward(packed, input_variable, target_variable):
    # Per-token LSTM gate inputs (bias folded in, gate order (i,f,o,g)); row = t*B + b.
    xg = packed["enc_gate_tab"][input_variable.T.reshape(-1)]    # (S*B, 4H)
    yg = packed["dec_gate_tab"][target_variable.T.reshape(-1)]   # (T*B, 4H)
    predict_value, logp_full, sym = _nao_call(xg, yg, packed["w_pack"])
    decoder_outputs = logp_full[:, :V].reshape(T, B, V)   # (T, B, V) log-probs
    archs = sym.reshape(T, B)                             # (T, B) int32 greedy symbols
    return predict_value, decoder_outputs, archs


# ---------------- parameter preparation ----------------
def pack_params(p):
    """Pack PyTorch-layout params (weights pre-transposed to (in, out), gate order
    (i, f, g, o), summed LSTM biases) into the kernel's fused representation."""
    # gate column permutation (i, f, g, o) -> (i, f, o, g)
    perm = jnp.concatenate([jnp.arange(0, H), jnp.arange(H, 2 * H),
                            jnp.arange(3 * H, 4 * H), jnp.arange(2 * H, 3 * H)])
    enc_wih, enc_whh, enc_b = p["enc_wih"][:, perm], p["enc_whh"][:, perm], p["enc_b"][:, perm]
    dec_wih, dec_whh, dec_b = p["dec_wih"][:, perm], p["dec_whh"][:, perm], p["dec_b"][:, perm]

    # Per-token input-projection lookup tables: emb @ W_ih + (b_ih + b_hh).
    enc_gate_tab = (p["emb_enc"] @ enc_wih + enc_b).astype(jnp.float32)   # (V, 4H)
    dec_gate_tab = (p["emb_dec"] @ dec_wih + dec_b).astype(jnp.float32)   # (V, 4H)

    wp = jnp.zeros((SLAB_ROWS, LANES), jnp.float32)
    wp = wp.at[ROW_ENC_WHH:ROW_ENC_WHH + H, :].set(enc_whh)
    wp = wp.at[ROW_DEC_WHH:ROW_DEC_WHH + H, :].set(dec_whh)
    wp = wp.at[ROW_ATT_CAT:ROW_ATT_CAT + H, :H].set(p["attn_wm"])
    wp = wp.at[ROW_ATT_CAT + H:ROW_ATT_CAT + 2 * H, :H].set(p["attn_wo"])
    wp = wp.at[ROW_OUT_W:ROW_OUT_W + H, :V].set(p["out_w"])
    wp = wp.at[ROW_MLP_W0:ROW_MLP_W0 + H, :M].set(p["mlp_w0"])
    wp = wp.at[ROW_MLP_W1:ROW_MLP_W1 + M, :M].set(p["mlp_w1"])
    wp = wp.at[ROW_REG_W:ROW_REG_W + M, :1].set(p["reg_w"])
    wp = wp.at[ROW_BIAS + 0, :H].set(p["attn_b"][0])
    wp = wp.at[ROW_BIAS + 1, :V].set(p["out_b"][0])
    wp = wp.at[ROW_BIAS + 2, :M].set(p["mlp_b0"][0])
    wp = wp.at[ROW_BIAS + 3, :M].set(p["mlp_b1"][0])
    wp = wp.at[ROW_BIAS + 4, :1].set(p["reg_b"][0])
    return {"enc_gate_tab": enc_gate_tab, "dec_gate_tab": dec_gate_tab, "w_pack": wp}


def init_params(key):
    ks = jax.random.split(key, 16)
    n = lambda k, shape, s=0.1: (jax.random.normal(k, shape, jnp.float32) * s)
    p = {}
    # encoder
    p["emb_enc"] = n(ks[0], (V, H))
    p["enc_wih"] = n(ks[1], (H, 4 * H))
    p["enc_whh"] = n(ks[2], (H, 4 * H))
    p["enc_b"] = n(ks[3], (1, 4 * H))     # = b_ih + b_hh
    p["mlp_w0"] = n(ks[4], (H, M))
    p["mlp_b0"] = n(ks[5], (1, M))
    p["mlp_w1"] = n(ks[6], (M, M))
    p["mlp_b1"] = n(ks[7], (1, M))
    p["reg_w"] = n(ks[8], (M, 1))
    p["reg_b"] = n(ks[9], (1, 1))
    # decoder
    p["emb_dec"] = n(ks[10], (V, H))
    p["dec_wih"] = n(ks[11], (H, 4 * H))
    p["dec_whh"] = n(ks[12], (H, 4 * H))
    p["dec_b"] = n(ks[13], (1, 4 * H))    # = b_ih + b_hh
    p["attn_wm"] = n(ks[14], (H, H))
    p["attn_wo"] = n(ks[15], (H, H))
    p["attn_b"] = jnp.zeros((1, H), jnp.float32)
    p["out_w"] = n(jax.random.fold_in(key, 99), (H, V))
    p["out_b"] = jnp.zeros((1, V), jnp.float32)
    return p


if __name__ == "__main__":
    key = jax.random.PRNGKey(0)
    pk, ik, tk = jax.random.split(key, 3)
    params = init_params(pk)
    packed = pack_params(params)
    input_variable = jax.random.randint(ik, (B, S), 0, V, dtype=jnp.int32)
    target_variable = jax.random.randint(tk, (B, T), 0, V, dtype=jnp.int32)

    predict_value, decoder_outputs, archs = nao_forward(packed, input_variable, target_variable)
    jax.block_until_ready((predict_value, decoder_outputs, archs))

    assert predict_value.shape == (B, 1)
    assert decoder_outputs.shape == (T, B, V)
    assert archs.shape == (T, B)
    assert bool(jnp.all(jnp.isfinite(predict_value)))
    assert bool(jnp.all(jnp.isfinite(decoder_outputs)))
    assert bool(jnp.all((archs >= 0) & (archs < V)))
    print("KERNEL_OK")
</pallas_src>

<mosaic_0001>
module attributes {stable_mosaic.version = 11 : i64} {
  func.func @nao_kernel(%arg0: i32, %arg1: memref<16x128xf32, #tpu.memory_space<vmem>>, %arg2: memref<16x128xf32, #tpu.memory_space<vmem>>, %arg3: memref<552x128xf32, #tpu.memory_space<vmem>>, %arg4: memref<2x1xf32, #tpu.memory_space<vmem>>, %arg5: memref<16x128xf32, #tpu.memory_space<vmem>>, %arg6: memref<16x1xi32, #tpu.memory_space<vmem>>, %arg7: memref<16x32xf32, #tpu.memory_space<vmem>>, %arg8: memref<16x32xf32, #tpu.memory_space<vmem>>) attributes {dimension_semantics = [#tpu.dimension_semantics<arbitrary>], iteration_bounds = array<i64: 1>, scalar_prefetch = 0 : i64, scratch_operands = 2 : i64, tpu.core_type = #tpu.core_type<tc>, window_params = [{pipeline_mode = #tpu.pipeline_mode<synchronous>, transform_indices = @transform_0, window_bounds = array<i64: 16, 128>}, {pipeline_mode = #tpu.pipeline_mode<synchronous>, transform_indices = @transform_1, window_bounds = array<i64: 16, 128>}, {pipeline_mode = #tpu.pipeline_mode<synchronous>, transform_indices = @transform_2, window_bounds = array<i64: 552, 128>}, {pipeline_mode = #tpu.pipeline_mode<synchronous>, transform_indices = @transform_3, window_bounds = array<i64: 2, 1>}, {pipeline_mode = #tpu.pipeline_mode<synchronous>, transform_indices = @transform_4, window_bounds = array<i64: 16, 128>}, {pipeline_mode = #tpu.pipeline_mode<synchronous>, transform_indices = @transform_5, window_bounds = array<i64: 16, 1>}]} {
    %c0 = arith.constant 0 : index
    %c0_0 = arith.constant 0 : index
    %0 = vector.load %arg3[%c0, %c0_0] : memref<552x128xf32, #tpu.memory_space<vmem>>, vector<32x128xf32>
    %c32 = arith.constant 32 : index
    %c0_1 = arith.constant 0 : index
    %1 = vector.load %arg3[%c32, %c0_1] : memref<552x128xf32, #tpu.memory_space<vmem>>, vector<32x128xf32>
    %cst = arith.constant 0.000000e+00 : f32
    %2 = vector.broadcast %cst : f32 to vector<2x32xf32>
    %cst_2 = arith.constant 0.000000e+00 : f32
    %3 = vector.broadcast %cst_2 : f32 to vector<2x32xf32>
    %c0_3 = arith.constant 0 : index
    %c0_4 = arith.constant 0 : index
    %4 = vector.load %arg1[%c0_3, %c0_4] : memref<16x128xf32, #tpu.memory_space<vmem>>, vector<2x128xf32>
    %cst_5 = arith.constant dense<0.000000e+00> : vector<2x128xf32>
    %5 = tpu.matmul %2, %0, %cst_5 {dimension_numbers = #tpu.dot_dimension_numbers<[1], [0], [0], [1], [0, 0, 1, 1], [], []>} : vector<2x32xf32>, vector<32x128xf32>, vector<2x128xf32> -> vector<2x128xf32>
    %6 = arith.addf %4, %5 : vector<2x128xf32>
    %7 = vector.extract_strided_slice %6 {offsets = [0, 0], sizes = [2, 96], strides = [1, 1]} : vector<2x128xf32> to vector<2x96xf32>
    %8 = arith.negf %7 : vector<2x96xf32>
    %9 = math.exp %8 : vector<2x96xf32>
    %cst_6 = arith.constant 1.000000e+00 : f32
    %10 = vector.broadcast %cst_6 : f32 to vector<2x96xf32>
    %11 = arith.addf %10, %9 : vector<2x96xf32>
    %12 = arith.divf %10, %11 : vector<2x96xf32>
    %13 = vector.extract_strided_slice %6 {offsets = [0, 96], sizes = [2, 32], strides = [1, 1]} : vector<2x128xf32> to vector<2x32xf32>
    %14 = math.tanh %13 : vector<2x32xf32>
    %15 = vector.extract_strided_slice %12 {offsets = [0, 32], sizes = [2, 32], strides = [1, 1]} : vector<2x96xf32> to vector<2x32xf32>
    %16 = arith.mulf %15, %3 : vector<2x32xf32>
    %17 = vector.extract_strided_slice %12 {offsets = [0, 0], sizes = [2, 32], strides = [1, 1]} : vector<2x96xf32> to vector<2x32xf32>
    %18 = arith.mulf %17, %14 : vector<2x32xf32>
    %19 = arith.addf %16, %18 : vector<2x32xf32>
    %20 = vector.extract_strided_slice %12 {offsets = [0, 64], sizes = [2, 32], strides = [1, 1]} : vector<2x96xf32> to vector<2x32xf32>
    %21 = math.tanh %19 : vector<2x32xf32>
    %22 = arith.mulf %20, %21 : vector<2x32xf32>
    %c0_7 = arith.constant 0 : index
    %c0_8 = arith.constant 0 : index
    %23 = vector.load %arg7[%c0_7, %c0_8] : memref<16x32xf32, #tpu.memory_space<vmem>>, vector<2x32xf32>
    tpu.vector_store %arg7[%c0_7, %c0_8], %22 {strides = array<i32>} : memref<16x32xf32, #tpu.memory_space<vmem>>, vector<2x32xf32>,
    %c2 = arith.constant 2 : index
    %c0_9 = arith.constant 0 : index
    %24 = vector.load %arg1[%c2, %c0_9] : memref<16x128xf32, #tpu.memory_space<vmem>>, vector<2x128xf32>
    %cst_10 = arith.constant dense<0.000000e+00> : vector<2x128xf32>
    %25 = tpu.matmul %22, %0, %cst_10 {dimension_numbers = #tpu.dot_dimension_numbers<[1], [0], [0], [1], [0, 0, 1, 1], [], []>} : vector<2x32xf32>, vector<32x128xf32>, vector<2x128xf32> -> vector<2x128xf32>
    %26 = arith.addf %24, %25 : vector<2x128xf32>
    %27 = vector.extract_strided_slice %26 {offsets = [0, 0], sizes = [2, 96], strides = [1, 1]} : vector<2x128xf32> to vector<2x96xf32>
    %28 = arith.negf %27 : vector<2x96xf32>
    %29 = math.exp %28 : vector<2x96xf32>
    %cst_11 = arith.constant 1.000000e+00 : f32
    %30 = vector.broadcast %cst_11 : f32 to vector<2x96xf32>
    %31 = arith.addf %30, %29 : vector<2x96xf32>
    %32 = arith.divf %30, %31 : vector<2x96xf32>
    %33 = vector.extract_strided_slice %26 {offsets = [0, 96], sizes = [2, 32], strides = [1, 1]} : vector<2x128xf32> to vector<2x32xf32>
    %34 = math.tanh %33 : vector<2x32xf32>
    %35 = vector.extract_strided_slice %32 {offsets = [0, 32], sizes = [2, 32], strides = [1, 1]} : vector<2x96xf32> to vector<2x32xf32>
    %36 = arith.mulf %35, %19 : vector<2x32xf32>
    %37 = vector.extract_strided_slice %32 {offsets = [0, 0], sizes = [2, 32], strides = [1, 1]} : vector<2x96xf32> to vector<2x32xf32>
    %38 = arith.mulf %37, %34 : vector<2x32xf32>
    %39 = arith.addf %36, %38 : vector<2x32xf32>
    %40 = vector.extract_strided_slice %32 {offsets = [0, 64], sizes = [2, 32], strides = [1, 1]} : vector<2x96xf32> to vector<2x32xf32>
    %41 = math.tanh %39 : vector<2x32xf32>
    %42 = arith.mulf %40, %41 : vector<2x32xf32>
    %c2_12 = arith.constant 2 : index
    %c0_13 = arith.constant 0 : index
    %43 = vector.load %arg7[%c2_12, %c0_13] : memref<16x32xf32, #tpu.memory_space<vmem>>, vector<2x32xf32>
    tpu.vector_store %arg7[%c2_12, %c0_13], %42 {strides = array<i32>} : memref<16x32xf32, #tpu.memory_space<vmem>>, vector<2x32xf32>,
    %c4 = arith.constant 4 : index
    %c0_14 = arith.constant 0 : index
    %44 = vector.load %arg1[%c4, %c0_14] : memref<16x128xf32, #tpu.memory_space<vmem>>, vector<2x128xf32>
    %cst_15 = arith.constant dense<0.000000e+00> : vector<2x128xf32>
    %45 = tpu.matmul %42, %0, %cst_15 {dimension_numbers = #tpu.dot_dimension_numbers<[1], [0], [0], [1], [0, 0, 1, 1], [], []>} : vector<2x32xf32>, vector<32x128xf32>, vector<2x128xf32> -> vector<2x128xf32>
    %46 = arith.addf %44, %45 : vector<2x128xf32>
    %47 = vector.extract_strided_slice %46 {offsets = [0, 0], sizes = [2, 96], strides = [1, 1]} : vector<2x128xf32> to vector<2x96xf32>
    %48 = arith.negf %47 : vector<2x96xf32>
    %49 = math.exp %48 : vector<2x96xf32>
    %cst_16 = arith.constant 1.000000e+00 : f32
    %50 = vector.broadcast %cst_16 : f32 to vector<2x96xf32>
    %51 = arith.addf %50, %49 : vector<2x96xf32>
    %52 = arith.divf %50, %51 : vector<2x96xf32>
    %53 = vector.extract_strided_slice %46 {offsets = [0, 96], sizes = [2, 32], strides = [1, 1]} : vector<2x128xf32> to vector<2x32xf32>
    %54 = math.tanh %53 : vector<2x32xf32>
    %55 = vector.extract_strided_slice %52 {offsets = [0, 32], sizes = [2, 32], strides = [1, 1]} : vector<2x96xf32> to vector<2x32xf32>
    %56 = arith.mulf %55, %39 : vector<2x32xf32>
    %57 = vector.extract_strided_slice %52 {offsets = [0, 0], sizes = [2, 32], strides = [1, 1]} : vector<2x96xf32> to vector<2x32xf32>
    %58 = arith.mulf %57, %54 : vector<2x32xf32>
    %59 = arith.addf %56, %58 : vector<2x32xf32>
    %60 = vector.extract_strided_slice %52 {offsets = [0, 64], sizes = [2, 32], strides = [1, 1]} : vector<2x96xf32> to vector<2x32xf32>
    %61 = math.tanh %59 : vector<2x32xf32>
    %62 = arith.mulf %60, %61 : vector<2x32xf32>
    %c4_17 = arith.constant 4 : index
    %c0_18 = arith.constant 0 : index
    %63 = vector.load %arg7[%c4_17, %c0_18] : memref<16x32xf32, #tpu.memory_space<vmem>>, vector<2x32xf32>
    tpu.vector_store %arg7[%c4_17, %c0_18], %62 {strides = array<i32>} : memref<16x32xf32, #tpu.memory_space<vmem>>, vector<2x32xf32>,
    %c6 = arith.constant 6 : index
    %c0_19 = arith.constant 0 : index
    %64 = vector.load %arg1[%c6, %c0_19] : memref<16x128xf32, #tpu.memory_space<vmem>>, vector<2x128xf32>
    %cst_20 = arith.constant dense<0.000000e+00> : vector<2x128xf32>
    %65 = tpu.matmul %62, %0, %cst_20 {dimension_numbers = #tpu.dot_dimension_numbers<[1], [0], [0], [1], [0, 0, 1, 1], [], []>} : vector<2x32xf32>, vector<32x128xf32>, vector<2x128xf32> -> vector<2x128xf32>
    %66 = arith.addf %64, %65 : vector<2x128xf32>
    %67 = vector.extract_strided_slice %66 {offsets = [0, 0], sizes = [2, 96], strides = [1, 1]} : vector<2x128xf32> to vector<2x96xf32>
    %68 = arith.negf %67 : vector<2x96xf32>
    %69 = math.exp %68 : vector<2x96xf32>
    %cst_21 = arith.constant 1.000000e+00 : f32
    %70 = vector.broadcast %cst_21 : f32 to vector<2x96xf32>
    %71 = arith.addf %70, %69 : vector<2x96xf32>
    %72 = arith.divf %70, %71 : vector<2x96xf32>
    %73 = vector.extract_strided_slice %66 {offsets = [0, 96], sizes = [2, 32], strides = [1, 1]} : vector<2x128xf32> to vector<2x32xf32>
    %74 = math.tanh %73 : vector<2x32xf32>
    %75 = vector.extract_strided_slice %72 {offsets = [0, 32], sizes = [2, 32], strides = [1, 1]} : vector<2x96xf32> to vector<2x32xf32>
    %76 = arith.mulf %75, %59 : vector<2x32xf32>
    %77 = vector.extract_strided_slice %72 {offsets = [0, 0], sizes = [2, 32], strides = [1, 1]} : vector<2x96xf32> to vector<2x32xf32>
    %78 = arith.mulf %77, %74 : vector<2x32xf32>
    %79 = arith.addf %76, %78 : vector<2x32xf32>
    %80 = vector.extract_strided_slice %72 {offsets = [0, 64], sizes = [2, 32], strides = [1, 1]} : vector<2x96xf32> to vector<2x32xf32>
    %81 = math.tanh %79 : vector<2x32xf32>
    %82 = arith.mulf %80, %81 : vector<2x32xf32>
    %c6_22 = arith.constant 6 : index
    %c0_23 = arith.constant 0 : index
    %83 = vector.load %arg7[%c6_22, %c0_23] : memref<16x32xf32, #tpu.memory_space<vmem>>, vector<2x32xf32>
    tpu.vector_store %arg7[%c6_22, %c0_23], %82 {strides = array<i32>} : memref<16x32xf32, #tpu.memory_space<vmem>>, vector<2x32xf32>,
    %c8 = arith.constant 8 : index
    %c0_24 = arith.constant 0 : index
    %84 = vector.load %arg1[%c8, %c0_24] : memref<16x128xf32, #tpu.memory_space<vmem>>, vector<2x128xf32>
    %cst_25 = arith.constant dense<0.000000e+00> : vector<2x128xf32>
    %85 = tpu.matmul %82, %0, %cst_25 {dimension_numbers = #tpu.dot_dimension_numbers<[1], [0], [0], [1], [0, 0, 1, 1], [], []>} : vector<2x32xf32>, vector<32x128xf32>, vector<2x128xf32> -> vector<2x128xf32>
    %86 = arith.addf %84, %85 : vector<2x128xf32>
    %87 = vector.extract_strided_slice %86 {offsets = [0, 0], sizes = [2, 96], strides = [1, 1]} : vector<2x128xf32> to vector<2x96xf32>
    %88 = arith.negf %87 : vector<2x96xf32>
    %89 = math.exp %88 : vector<2x96xf32>
    %cst_26 = arith.constant 1.000000e+00 : f32
    %90 = vector.broadcast %cst_26 : f32 to vector<2x96xf32>
    %91 = arith.addf %90, %89 : vector<2x96xf32>
    %92 = arith.divf %90, %91 : vector<2x96xf32>
    %93 = vector.extract_strided_slice %86 {offsets = [0, 96], sizes = [2, 32], strides = [1, 1]} : vector<2x128xf32> to vector<2x32xf32>
    %94 = math.tanh %93 : vector<2x32xf32>
    %95 = vector.extract_strided_slice %92 {offsets = [0, 32], sizes = [2, 32], strides = [1, 1]} : vector<2x96xf32> to vector<2x32xf32>
    %96 = arith.mulf %95, %79 : vector<2x32xf32>
    %97 = vector.extract_strided_slice %92 {offsets = [0, 0], sizes = [2, 32], strides = [1, 1]} : vector<2x96xf32> to vector<2x32xf32>
    %98 = arith.mulf %97, %94 : vector<2x32xf32>
    %99 = arith.addf %96, %98 : vector<2x32xf32>
    %100 = vector.extract_strided_slice %92 {offsets = [0, 64], sizes = [2, 32], strides = [1, 1]} : vector<2x96xf32> to vector<2x32xf32>
    %101 = math.tanh %99 : vector<2x32xf32>
    %102 = arith.mulf %100, %101 : vector<2x32xf32>
    %c8_27 = arith.constant 8 : index
    %c0_28 = arith.constant 0 : index
    %103 = vector.load %arg7[%c8_27, %c0_28] : memref<16x32xf32, #tpu.memory_space<vmem>>, vector<2x32xf32>
    tpu.vector_store %arg7[%c8_27, %c0_28], %102 {strides = array<i32>} : memref<16x32xf32, #tpu.memory_space<vmem>>, vector<2x32xf32>,
    %c10 = arith.constant 10 : index
    %c0_29 = arith.constant 0 : index
    %104 = vector.load %arg1[%c10, %c0_29] : memref<16x128xf32, #tpu.memory_space<vmem>>, vector<2x128xf32>
    %cst_30 = arith.constant dense<0.000000e+00> : vector<2x128xf32>
    %105 = tpu.matmul %102, %0, %cst_30 {dimension_numbers = #tpu.dot_dimension_numbers<[1], [0], [0], [1], [0, 0, 1, 1], [], []>} : vector<2x32xf32>, vector<32x128xf32>, vector<2x128xf32> -> vector<2x128xf32>
    %106 = arith.addf %104, %105 : vector<2x128xf32>
    %107 = vector.extract_strided_slice %106 {offsets = [0, 0], sizes = [2, 96], strides = [1, 1]} : vector<2x128xf32> to vector<2x96xf32>
    %108 = arith.negf %107 : vector<2x96xf32>
    %109 = math.exp %108 : vector<2x96xf32>
    %cst_31 = arith.constant 1.000000e+00 : f32
    %110 = vector.broadcast %cst_31 : f32 to vector<2x96xf32>
    %111 = arith.addf %110, %109 : vector<2x96xf32>
    %112 = arith.divf %110, %111 : vector<2x96xf32>
    %113 = vector.extract_strided_slice %106 {offsets = [0, 96], sizes = [2, 32], strides = [1, 1]} : vector<2x128xf32> to vector<2x32xf32>
    %114 = math.tanh %113 : vector<2x32xf32>
    %115 = vector.extract_strided_slice %112 {offsets = [0, 32], sizes = [2, 32], strides = [1, 1]} : vector<2x96xf32> to vector<2x32xf32>
    %116 = arith.mulf %115, %99 : vector<2x32xf32>
    %117 = vector.extract_strided_slice %112 {offsets = [0, 0], sizes = [2, 32], strides = [1, 1]} : vector<2x96xf32> to vector<2x32xf32>
    %118 = arith.mulf %117, %114 : vector<2x32xf32>
    %119 = arith.addf %116, %118 : vector<2x32xf32>
    %120 = vector.extract_strided_slice %112 {offsets = [0, 64], sizes = [2, 32], strides = [1, 1]} : vector<2x96xf32> to vector<2x32xf32>
    %121 = math.tanh %119 : vector<2x32xf32>
    %122 = arith.mulf %120, %121 : vector<2x32xf32>
    %c10_32 = arith.constant 10 : index
    %c0_33 = arith.constant 0 : index
    %123 = vector.load %arg7[%c10_32, %c0_33] : memref<16x32xf32, #tpu.memory_space<vmem>>, vector<2x32xf32>
    tpu.vector_store %arg7[%c10_32, %c0_33], %122 {strides = array<i32>} : memref<16x32xf32, #tpu.memory_space<vmem>>, vector<2x32xf32>,
    %c12 = arith.constant 12 : index
    %c0_34 = arith.constant 0 : index
    %124 = vector.load %arg1[%c12, %c0_34] : memref<16x128xf32, #tpu.memory_space<vmem>>, vector<2x128xf32>
    %cst_35 = arith.constant dense<0.000000e+00> : vector<2x128xf32>
    %125 = tpu.matmul %122, %0, %cst_35 {dimension_numbers = #tpu.dot_dimension_numbers<[1], [0], [0], [1], [0, 0, 1, 1], [], []>} : vector<2x32xf32>, vector<32x128xf32>, vector<2x128xf32> -> vector<2x128xf32>
    %126 = arith.addf %124, %125 : vector<2x128xf32>
    %127 = vector.extract_strided_slice %126 {offsets = [0, 0], sizes = [2, 96], strides = [1, 1]} : vector<2x128xf32> to vector<2x96xf32>
    %128 = arith.negf %127 : vector<2x96xf32>
    %129 = math.exp %128 : vector<2x96xf32>
    %cst_36 = arith.constant 1.000000e+00 : f32
    %130 = vector.broadcast %cst_36 : f32 to vector<2x96xf32>
    %131 = arith.addf %130, %129 : vector<2x96xf32>
    %132 = arith.divf %130, %131 : vector<2x96xf32>
    %133 = vector.extract_strided_slice %126 {offsets = [0, 96], sizes = [2, 32], strides = [1, 1]} : vector<2x128xf32> to vector<2x32xf32>
    %134 = math.tanh %133 : vector<2x32xf32>
    %135 = vector.extract_strided_slice %132 {offsets = [0, 32], sizes = [2, 32], strides = [1, 1]} : vector<2x96xf32> to vector<2x32xf32>
    %136 = arith.mulf %135, %119 : vector<2x32xf32>
    %137 = vector.extract_strided_slice %132 {offsets = [0, 0], sizes = [2, 32], strides = [1, 1]} : vector<2x96xf32> to vector<2x32xf32>
    %138 = arith.mulf %137, %134 : vector<2x32xf32>
    %139 = arith.addf %136, %138 : vector<2x32xf32>
    %140 = vector.extract_strided_slice %132 {offsets = [0, 64], sizes = [2, 32], strides = [1, 1]} : vector<2x96xf32> to vector<2x32xf32>
    %141 = math.tanh %139 : vector<2x32xf32>
    %142 = arith.mulf %140, %141 : vector<2x32xf32>
    %c12_37 = arith.constant 12 : index
    %c0_38 = arith.constant 0 : index
    %143 = vector.load %arg7[%c12_37, %c0_38] : memref<16x32xf32, #tpu.memory_space<vmem>>, vector<2x32xf32>
    tpu.vector_store %arg7[%c12_37, %c0_38], %142 {strides = array<i32>} : memref<16x32xf32, #tpu.memory_space<vmem>>, vector<2x32xf32>,
    %c14 = arith.constant 14 : index
    %c0_39 = arith.constant 0 : index
    %144 = vector.load %arg1[%c14, %c0_39] : memref<16x128xf32, #tpu.memory_space<vmem>>, vector<2x128xf32>
    %cst_40 = arith.constant dense<0.000000e+00> : vector<2x128xf32>
    %145 = tpu.matmul %142, %0, %cst_40 {dimension_numbers = #tpu.dot_dimension_numbers<[1], [0], [0], [1], [0, 0, 1, 1], [], []>} : vector<2x32xf32>, vector<32x128xf32>, vector<2x128xf32> -> vector<2x128xf32>
    %146 = arith.addf %144, %145 : vector<2x128xf32>
    %147 = vector.extract_strided_slice %146 {offsets = [0, 0], sizes = [2, 96], strides = [1, 1]} : vector<2x128xf32> to vector<2x96xf32>
    %148 = arith.negf %147 : vector<2x96xf32>
    %149 = math.exp %148 : vector<2x96xf32>
    %cst_41 = arith.constant 1.000000e+00 : f32
    %150 = vector.broadcast %cst_41 : f32 to vector<2x96xf32>
    %151 = arith.addf %150, %149 : vector<2x96xf32>
    %152 = arith.divf %150, %151 : vector<2x96xf32>
    %153 = vector.extract_strided_slice %146 {offsets = [0, 96], sizes = [2, 32], strides = [1, 1]} : vector<2x128xf32> to vector<2x32xf32>
    %154 = math.tanh %153 : vector<2x32xf32>
    %155 = vector.extract_strided_slice %152 {offsets = [0, 32], sizes = [2, 32], strides = [1, 1]} : vector<2x96xf32> to vector<2x32xf32>
    %156 = arith.mulf %155, %139 : vector<2x32xf32>
    %157 = vector.extract_strided_slice %152 {offsets = [0, 0], sizes = [2, 32], strides = [1, 1]} : vector<2x96xf32> to vector<2x32xf32>
    %158 = arith.mulf %157, %154 : vector<2x32xf32>
    %159 = arith.addf %156, %158 : vector<2x32xf32>
    %160 = vector.extract_strided_slice %152 {offsets = [0, 64], sizes = [2, 32], strides = [1, 1]} : vector<2x96xf32> to vector<2x32xf32>
    %161 = math.tanh %159 : vector<2x32xf32>
    %162 = arith.mulf %160, %161 : vector<2x32xf32>
    %c14_42 = arith.constant 14 : index
    %c0_43 = arith.constant 0 : index
    %163 = vector.load %arg7[%c14_42, %c0_43] : memref<16x32xf32, #tpu.memory_space<vmem>>, vector<2x32xf32>
    tpu.vector_store %arg7[%c14_42, %c0_43], %162 {strides = array<i32>} : memref<16x32xf32, #tpu.memory_space<vmem>>, vector<2x32xf32>,
    %c0_44 = arith.constant 0 : index
    %c0_45 = arith.constant 0 : index
    %164 = vector.load %arg7[%c0_44, %c0_45] : memref<16x32xf32, #tpu.memory_space<vmem>>, vector<16x32xf32>
    %165 = arith.mulf %164, %164 : vector<16x32xf32>
    %cst_46 = arith.constant dense<0.000000e+00> : vector<16xf32>
    %166 = vector.multi_reduction <add>, %165, %cst_46 [1] : vector<16x32xf32> to vector<16xf32>
    %167 = vector.shape_cast %166 : vector<16xf32> to vector<16x1xf32>
    %168 = math.sqrt %167 : vector<16x1xf32>
    %cst_47 = arith.constant 9.99999996E-13 : f32
    %169 = vector.broadcast %cst_47 : f32 to vector<16x1xf32>
    %170 = arith.maximumf %168, %169 : vector<16x1xf32>
    %171 = vector.broadcast %170 : vector<16x1xf32> to vector<16x32xf32>
    %172 = arith.divf %164, %171 : vector<16x32xf32>
    %173 = tpu.iota {dimensions = array<i32: 0>} : vector<16x1xi32>
    %c1_i32 = arith.constant 1 : i32
    %174 = vector.broadcast %c1_i32 : i32 to vector<16x1xi32>
    %175 = arith.andi %173, %174 : vector<16x1xi32>
    %c0_i32 = arith.constant 0 : i32
    %176 = vector.broadcast %c0_i32 : i32 to vector<16x1xi32>
    %177 = arith.cmpi eq, %175, %176 : vector<16x1xi32>
    %cst_48 = arith.constant 0.000000e+00 : f32
    %178 = vector.shape_cast %177 : vector<16x1xi1> to vector<16x1xi1>
    %179 = vector.broadcast %178 : vector<16x1xi1> to vector<16x32xi1>
    %180 = vector.broadcast %cst_48 : f32 to vector<16x32xf32>
    %181 = arith.select %179, %172, %180 : vector<16x32xi1>, vector<16x32xf32>
    %cst_49 = arith.constant dense<0.000000e+00> : vector<32xf32>
    %182 = vector.multi_reduction <add>, %181, %cst_49 [0] : vector<16x32xf32> to vector<32xf32>
    %183 = vector.shape_cast %182 : vector<32xf32> to vector<1x32xf32>
    %cst_50 = arith.constant 1.250000e-01 : f32
    %184 = vector.broadcast %cst_50 : f32 to vector<1x32xf32>
    %185 = arith.mulf %183, %184 : vector<1x32xf32>
    %c1_i32_51 = arith.constant 1 : i32
    %186 = vector.broadcast %c1_i32_51 : i32 to vector<16x1xi32>
    %187 = arith.andi %173, %186 : vector<16x1xi32>
    %c1_i32_52 = arith.constant 1 : i32
    %188 = vector.broadcast %c1_i32_52 : i32 to vector<16x1xi32>
    %189 = arith.cmpi eq, %187, %188 : vector<16x1xi32>
    %cst_53 = arith.constant 0.000000e+00 : f32
    %190 = vector.shape_cast %189 : vector<16x1xi1> to vector<16x1xi1>
    %191 = vector.broadcast %190 : vector<16x1xi1> to vector<16x32xi1>
    %192 = vector.broadcast %cst_53 : f32 to vector<16x32xf32>
    %193 = arith.select %191, %172, %192 : vector<16x32xi1>, vector<16x32xf32>
    %cst_54 = arith.constant dense<0.000000e+00> : vector<32xf32>
    %194 = vector.multi_reduction <add>, %193, %cst_54 [0] : vector<16x32xf32> to vector<32xf32>
    %195 = vector.shape_cast %194 : vector<32xf32> to vector<1x32xf32>
    %cst_55 = arith.constant 1.250000e-01 : f32
    %196 = vector.broadcast %cst_55 : f32 to vector<1x32xf32>
    %197 = arith.mulf %195, %196 : vector<1x32xf32>
    %198 = tpu.concatenate %185, %197 in 0 : vector<1x32xf32>, vector<1x32xf32> -> vector<2x32xf32>
    %199 = arith.mulf %198, %198 : vector<2x32xf32>
    %cst_56 = arith.constant dense<0.000000e+00> : vector<2xf32>
    %200 = vector.multi_reduction <add>, %199, %cst_56 [1] : vector<2x32xf32> to vector<2xf32>
    %201 = vector.shape_cast %200 : vector<2xf32> to vector<2x1xf32>
    %202 = math.sqrt %201 : vector<2x1xf32>
    %cst_57 = arith.constant 9.99999996E-13 : f32
    %203 = vector.broadcast %cst_57 : f32 to vector<2x1xf32>
    %204 = arith.maximumf %202, %203 : vector<2x1xf32>
    %205 = vector.broadcast %204 : vector<2x1xf32> to vector<2x32xf32>
    %206 = arith.divf %198, %205 : vector<2x32xf32>
    %c256 = arith.constant 256 : index
    %c0_58 = arith.constant 0 : index
    %207 = vector.load %arg3[%c256, %c0_58] : memref<552x128xf32, #tpu.memory_space<vmem>>, vector<32x128xf32>
    %c288 = arith.constant 288 : index
    %c0_59 = arith.constant 0 : index
    %208 = vector.load %arg3[%c288, %c0_59] : memref<552x128xf32, #tpu.memory_space<vmem>>, vector<128x128xf32>
    %c416 = arith.constant 416 : index
    %c0_60 = arith.constant 0 : index
    %209 = vector.load %arg3[%c416, %c0_60] : memref<552x128xf32, #tpu.memory_space<vmem>>, vector<128x128xf32>
    %c546 = arith.constant 546 : index
    %c0_61 = arith.constant 0 : index
    %210 = vector.load %arg3[%c546, %c0_61] : memref<552x128xf32, #tpu.memory_space<vmem>>, vector<1x128xf32>
    %c547 = arith.constant 547 : index
    %c0_62 = arith.constant 0 : index
    %211 = vector.load %arg3[%c547, %c0_62] : memref<552x128xf32, #tpu.memory_space<vmem>>, vector<1x128xf32>
    %c548 = arith.constant 548 : index
    %c0_63 = arith.constant 0 : index
    %212 = vector.load %arg3[%c548, %c0_63] : memref<552x128xf32, #tpu.memory_space<vmem>>, vector<1x128xf32>
    %cst_64 = arith.constant dense<0.000000e+00> : vector<2x128xf32>
    %213 = tpu.matmul %206, %207, %cst_64 {dimension_numbers = #tpu.dot_dimension_numbers<[1], [0], [0], [1], [0, 0, 1, 1], [], []>} : vector<2x32xf32>, vector<32x128xf32>, vector<2x128xf32> -> vector<2x128xf32>
    %214 = vector.broadcast %210 : vector<1x128xf32> to vector<2x128xf32>
    %215 = arith.addf %213, %214 : vector<2x128xf32>
    %cst_65 = arith.constant 0.000000e+00 : f32
    %216 = vector.broadcast %cst_65 : f32 to vector<2x128xf32>
    %217 = arith.maximumf %215, %216 : vector<2x128xf32>
    %cst_66 = arith.constant dense<0.000000e+00> : vector<2x128xf32>
    %218 = tpu.matmul %217, %208, %cst_66 {dimension_numbers = #tpu.dot_dimension_numbers<[1], [0], [0], [1], [0, 0, 1, 1], [], []>} : vector<2x128xf32>, vector<128x128xf32>, vector<2x128xf32> -> vector<2x128xf32>
    %219 = vector.broadcast %211 : vector<1x128xf32> to vector<2x128xf32>
    %220 = arith.addf %218, %219 : vector<2x128xf32>
    %cst_67 = arith.constant 0.000000e+00 : f32
    %221 = vector.broadcast %cst_67 : f32 to vector<2x128xf32>
    %222 = arith.maximumf %220, %221 : vector<2x128xf32>
    %cst_68 = arith.constant dense<0.000000e+00> : vector<2x128xf32>
    %223 = tpu.matmul %222, %209, %cst_68 {dimension_numbers = #tpu.dot_dimension_numbers<[1], [0], [0], [1], [0, 0, 1, 1], [], []>} : vector<2x128xf32>, vector<128x128xf32>, vector<2x128xf32> -> vector<2x128xf32>
    %224 = vector.broadcast %212 : vector<1x128xf32> to vector<2x128xf32>
    %225 = arith.addf %223, %224 : vector<2x128xf32>
    %226 = arith.negf %225 : vector<2x128xf32>
    %227 = math.exp %226 : vector<2x128xf32>
    %cst_69 = arith.constant 1.000000e+00 : f32
    %228 = vector.broadcast %cst_69 : f32 to vector<2x128xf32>
    %229 = arith.addf %228, %227 : vector<2x128xf32>
    %230 = arith.divf %228, %229 : vector<2x128xf32>
    %231 = vector.extract_strided_slice %230 {offsets = [0, 0], sizes = [2, 1], strides = [1, 1]} : vector<2x128xf32> to vector<2x1xf32>
    %c0_70 = arith.constant 0 : index
    %c0_71 = arith.constant 0 : index
    %232 = vector.load %arg4[%c0_70, %c0_71] : memref<2x1xf32, #tpu.memory_space<vmem>>, vector<2x1xf32>
    tpu.vector_store %arg4[%c0_70, %c0_71], %231 {strides = array<i32>} : memref<2x1xf32, #tpu.memory_space<vmem>>, vector<2x1xf32>,
    %c0_72 = arith.constant 0 : index
    %c0_73 = arith.constant 0 : index
    %233 = vector.load %arg2[%c0_72, %c0_73] : memref<16x128xf32, #tpu.memory_space<vmem>>, vector<2x128xf32>
    %cst_74 = arith.constant dense<0.000000e+00> : vector<2x128xf32>
    %234 = tpu.matmul %206, %1, %cst_74 {dimension_numbers = #tpu.dot_dimension_numbers<[1], [0], [0], [1], [0, 0, 1, 1], [], []>} : vector<2x32xf32>, vector<32x128xf32>, vector<2x128xf32> -> vector<2x128xf32>
    %235 = arith.addf %233, %234 : vector<2x128xf32>
    %236 = vector.extract_strided_slice %235 {offsets = [0, 0], sizes = [2, 96], strides = [1, 1]} : vector<2x128xf32> to vector<2x96xf32>
    %237 = arith.negf %236 : vector<2x96xf32>
    %238 = math.exp %237 : vector<2x96xf32>
    %cst_75 = arith.constant 1.000000e+00 : f32
    %239 = vector.broadcast %cst_75 : f32 to vector<2x96xf32>
    %240 = arith.addf %239, %238 : vector<2x96xf32>
    %241 = arith.divf %239, %240 : vector<2x96xf32>
    %242 = vector.extract_strided_slice %235 {offsets = [0, 96], sizes = [2, 32], strides = [1, 1]} : vector<2x128xf32> to vector<2x32xf32>
    %243 = math.tanh %242 : vector<2x32xf32>
    %244 = vector.extract_strided_slice %241 {offsets = [0, 32], sizes = [2, 32], strides = [1, 1]} : vector<2x96xf32> to vector<2x32xf32>
    %245 = arith.mulf %244, %206 : vector<2x32xf32>
    %246 = vector.extract_strided_slice %241 {offsets = [0, 0], sizes = [2, 32], strides = [1, 1]} : vector<2x96xf32> to vector<2x32xf32>
    %247 = arith.mulf %246, %243 : vector<2x32xf32>
    %248 = arith.addf %245, %247 : vector<2x32xf32>
    %249 = vector.extract_strided_slice %241 {offsets = [0, 64], sizes = [2, 32], strides = [1, 1]} : vector<2x96xf32> to vector<2x32xf32>
    %250 = math.tanh %248 : vector<2x32xf32>
    %251 = arith.mulf %249, %250 : vector<2x32xf32>
    %c0_76 = arith.constant 0 : index
    %c0_77 = arith.constant 0 : index
    %252 = vector.load %arg8[%c0_76, %c0_77] : memref<16x32xf32, #tpu.memory_space<vmem>>, vector<2x32xf32>
    tpu.vector_store %arg8[%c0_76, %c0_77], %251 {strides = array<i32>} : memref<16x32xf32, #tpu.memory_space<vmem>>, vector<2x32xf32>,
    %c2_78 = arith.constant 2 : index
    %c0_79 = arith.constant 0 : index
    %253 = vector.load %arg2[%c2_78, %c0_79] : memref<16x128xf32, #tpu.memory_space<vmem>>, vector<2x128xf32>
    %cst_80 = arith.constant dense<0.000000e+00> : vector<2x128xf32>
    %254 = tpu.matmul %251, %1, %cst_80 {dimension_numbers = #tpu.dot_dimension_numbers<[1], [0], [0], [1], [0, 0, 1, 1], [], []>} : vector<2x32xf32>, vector<32x128xf32>, vector<2x128xf32> -> vector<2x128xf32>
    %255 = arith.addf %253, %254 : vector<2x128xf32>
    %256 = vector.extract_strided_slice %255 {offsets = [0, 0], sizes = [2, 96], strides = [1, 1]} : vector<2x128xf32> to vector<2x96xf32>
    %257 = arith.negf %256 : vector<2x96xf32>
    %258 = math.exp %257 : vector<2x96xf32>
    %cst_81 = arith.constant 1.000000e+00 : f32
    %259 = vector.broadcast %cst_81 : f32 to vector<2x96xf32>
    %260 = arith.addf %259, %258 : vector<2x96xf32>
    %261 = arith.divf %259, %260 : vector<2x96xf32>
    %262 = vector.extract_strided_slice %255 {offsets = [0, 96], sizes = [2, 32], strides = [1, 1]} : vector<2x128xf32> to vector<2x32xf32>
    %263 = math.tanh %262 : vector<2x32xf32>
    %264 = vector.extract_strided_slice %261 {offsets = [0, 32], sizes = [2, 32], strides = [1, 1]} : vector<2x96xf32> to vector<2x32xf32>
    %265 = arith.mulf %264, %248 : vector<2x32xf32>
    %266 = vector.extract_strided_slice %261 {offsets = [0, 0], sizes = [2, 32], strides = [1, 1]} : vector<2x96xf32> to vector<2x32xf32>
    %267 = arith.mulf %266, %263 : vector<2x32xf32>
    %268 = arith.addf %265, %267 : vector<2x32xf32>
    %269 = vector.extract_strided_slice %261 {offsets = [0, 64], sizes = [2, 32], strides = [1, 1]} : vector<2x96xf32> to vector<2x32xf32>
    %270 = math.tanh %268 : vector<2x32xf32>
    %271 = arith.mulf %269, %270 : vector<2x32xf32>
    %c2_82 = arith.constant 2 : index
    %c0_83 = arith.constant 0 : index
    %272 = vector.load %arg8[%c2_82, %c0_83] : memref<16x32xf32, #tpu.memory_space<vmem>>, vector<2x32xf32>
    tpu.vector_store %arg8[%c2_82, %c0_83], %271 {strides = array<i32>} : memref<16x32xf32, #tpu.memory_space<vmem>>, vector<2x32xf32>,
    %c4_84 = arith.constant 4 : index
    %c0_85 = arith.constant 0 : index
    %273 = vector.load %arg2[%c4_84, %c0_85] : memref<16x128xf32, #tpu.memory_space<vmem>>, vector<2x128xf32>
    %cst_86 = arith.constant dense<0.000000e+00> : vector<2x128xf32>
    %274 = tpu.matmul %271, %1, %cst_86 {dimension_numbers = #tpu.dot_dimension_numbers<[1], [0], [0], [1], [0, 0, 1, 1], [], []>} : vector<2x32xf32>, vector<32x128xf32>, vector<2x128xf32> -> vector<2x128xf32>
    %275 = arith.addf %273, %274 : vector<2x128xf32>
    %276 = vector.extract_strided_slice %275 {offsets = [0, 0], sizes = [2, 96], strides = [1, 1]} : vector<2x128xf32> to vector<2x96xf32>
    %277 = arith.negf %276 : vector<2x96xf32>
    %278 = math.exp %277 : vector<2x96xf32>
    %cst_87 = arith.constant 1.000000e+00 : f32
    %279 = vector.broadcast %cst_87 : f32 to vector<2x96xf32>
    %280 = arith.addf %279, %278 : vector<2x96xf32>
    %281 = arith.divf %279, %280 : vector<2x96xf32>
    %282 = vector.extract_strided_slice %275 {offsets = [0, 96], sizes = [2, 32], strides = [1, 1]} : vector<2x128xf32> to vector<2x32xf32>
    %283 = math.tanh %282 : vector<2x32xf32>
    %284 = vector.extract_strided_slice %281 {offsets = [0, 32], sizes = [2, 32], strides = [1, 1]} : vector<2x96xf32> to vector<2x32xf32>
    %285 = arith.mulf %284, %268 : vector<2x32xf32>
    %286 = vector.extract_strided_slice %281 {offsets = [0, 0], sizes = [2, 32], strides = [1, 1]} : vector<2x96xf32> to vector<2x32xf32>
    %287 = arith.mulf %286, %283 : vector<2x32xf32>
    %288 = arith.addf %285, %287 : vector<2x32xf32>
    %289 = vector.extract_strided_slice %281 {offsets = [0, 64], sizes = [2, 32], strides = [1, 1]} : vector<2x96xf32> to vector<2x32xf32>
    %290 = math.tanh %288 : vector<2x32xf32>
    %291 = arith.mulf %289, %290 : vector<2x32xf32>
    %c4_88 = arith.constant 4 : index
    %c0_89 = arith.constant 0 : index
    %292 = vector.load %arg8[%c4_88, %c0_89] : memref<16x32xf32, #tpu.memory_space<vmem>>, vector<2x32xf32>
    tpu.vector_store %arg8[%c4_88, %c0_89], %291 {strides = array<i32>} : memref<16x32xf32, #tpu.memory_space<vmem>>, vector<2x32xf32>,
    %c6_90 = arith.constant 6 : index
    %c0_91 = arith.constant 0 : index
    %293 = vector.load %arg2[%c6_90, %c0_91] : memref<16x128xf32, #tpu.memory_space<vmem>>, vector<2x128xf32>
    %cst_92 = arith.constant dense<0.000000e+00> : vector<2x128xf32>
    %294 = tpu.matmul %291, %1, %cst_92 {dimension_numbers = #tpu.dot_dimension_numbers<[1], [0], [0], [1], [0, 0, 1, 1], [], []>} : vector<2x32xf32>, vector<32x128xf32>, vector<2x128xf32> -> vector<2x128xf32>
    %295 = arith.addf %293, %294 : vector<2x128xf32>
    %296 = vector.extract_strided_slice %295 {offsets = [0, 0], sizes = [2, 96], strides = [1, 1]} : vector<2x128xf32> to vector<2x96xf32>
    %297 = arith.negf %296 : vector<2x96xf32>
    %298 = math.exp %297 : vector<2x96xf32>
    %cst_93 = arith.constant 1.000000e+00 : f32
    %299 = vector.broadcast %cst_93 : f32 to vector<2x96xf32>
    %300 = arith.addf %299, %298 : vector<2x96xf32>
    %301 = arith.divf %299, %300 : vector<2x96xf32>
    %302 = vector.extract_strided_slice %295 {offsets = [0, 96], sizes = [2, 32], strides = [1, 1]} : vector<2x128xf32> to vector<2x32xf32>
    %303 = math.tanh %302 : vector<2x32xf32>
    %304 = vector.extract_strided_slice %301 {offsets = [0, 32], sizes = [2, 32], strides = [1, 1]} : vector<2x96xf32> to vector<2x32xf32>
    %305 = arith.mulf %304, %288 : vector<2x32xf32>
    %306 = vector.extract_strided_slice %301 {offsets = [0, 0], sizes = [2, 32], strides = [1, 1]} : vector<2x96xf32> to vector<2x32xf32>
    %307 = arith.mulf %306, %303 : vector<2x32xf32>
    %308 = arith.addf %305, %307 : vector<2x32xf32>
    %309 = vector.extract_strided_slice %301 {offsets = [0, 64], sizes = [2, 32], strides = [1, 1]} : vector<2x96xf32> to vector<2x32xf32>
    %310 = math.tanh %308 : vector<2x32xf32>
    %311 = arith.mulf %309, %310 : vector<2x32xf32>
    %c6_94 = arith.constant 6 : index
    %c0_95 = arith.constant 0 : index
    %312 = vector.load %arg8[%c6_94, %c0_95] : memref<16x32xf32, #tpu.memory_space<vmem>>, vector<2x32xf32>
    tpu.vector_store %arg8[%c6_94, %c0_95], %311 {strides = array<i32>} : memref<16x32xf32, #tpu.memory_space<vmem>>, vector<2x32xf32>,
    %c8_96 = arith.constant 8 : index
    %c0_97 = arith.constant 0 : index
    %313 = vector.load %arg2[%c8_96, %c0_97] : memref<16x128xf32, #tpu.memory_space<vmem>>, vector<2x128xf32>
    %cst_98 = arith.constant dense<0.000000e+00> : vector<2x128xf32>
    %314 = tpu.matmul %311, %1, %cst_98 {dimension_numbers = #tpu.dot_dimension_numbers<[1], [0], [0], [1], [0, 0, 1, 1], [], []>} : vector<2x32xf32>, vector<32x128xf32>, vector<2x128xf32> -> vector<2x128xf32>
    %315 = arith.addf %313, %314 : vector<2x128xf32>
    %316 = vector.extract_strided_slice %315 {offsets = [0, 0], sizes = [2, 96], strides = [1, 1]} : vector<2x128xf32> to vector<2x96xf32>
    %317 = arith.negf %316 : vector<2x96xf32>
    %318 = math.exp %317 : vector<2x96xf32>
    %cst_99 = arith.constant 1.000000e+00 : f32
    %319 = vector.broadcast %cst_99 : f32 to vector<2x96xf32>
    %320 = arith.addf %319, %318 : vector<2x96xf32>
    %321 = arith.divf %319, %320 : vector<2x96xf32>
    %322 = vector.extract_strided_slice %315 {offsets = [0, 96], sizes = [2, 32], strides = [1, 1]} : vector<2x128xf32> to vector<2x32xf32>
    %323 = math.tanh %322 : vector<2x32xf32>
    %324 = vector.extract_strided_slice %321 {offsets = [0, 32], sizes = [2, 32], strides = [1, 1]} : vector<2x96xf32> to vector<2x32xf32>
    %325 = arith.mulf %324, %308 : vector<2x32xf32>
    %326 = vector.extract_strided_slice %321 {offsets = [0, 0], sizes = [2, 32], strides = [1, 1]} : vector<2x96xf32> to vector<2x32xf32>
    %327 = arith.mulf %326, %323 : vector<2x32xf32>
    %328 = arith.addf %325, %327 : vector<2x32xf32>
    %329 = vector.extract_strided_slice %321 {offsets = [0, 64], sizes = [2, 32], strides = [1, 1]} : vector<2x96xf32> to vector<2x32xf32>
    %330 = math.tanh %328 : vector<2x32xf32>
    %331 = arith.mulf %329, %330 : vector<2x32xf32>
    %c8_100 = arith.constant 8 : index
    %c0_101 = arith.constant 0 : index
    %332 = vector.load %arg8[%c8_100, %c0_101] : memref<16x32xf32, #tpu.memory_space<vmem>>, vector<2x32xf32>
    tpu.vector_store %arg8[%c8_100, %c0_101], %331 {strides = array<i32>} : memref<16x32xf32, #tpu.memory_space<vmem>>, vector<2x32xf32>,
    %c10_102 = arith.constant 10 : index
    %c0_103 = arith.constant 0 : index
    %333 = vector.load %arg2[%c10_102, %c0_103] : memref<16x128xf32, #tpu.memory_space<vmem>>, vector<2x128xf32>
    %cst_104 = arith.constant dense<0.000000e+00> : vector<2x128xf32>
    %334 = tpu.matmul %331, %1, %cst_104 {dimension_numbers = #tpu.dot_dimension_numbers<[1], [0], [0], [1], [0, 0, 1, 1], [], []>} : vector<2x32xf32>, vector<32x128xf32>, vector<2x128xf32> -> vector<2x128xf32>
    %335 = arith.addf %333, %334 : vector<2x128xf32>
    %336 = vector.extract_strided_slice %335 {offsets = [0, 0], sizes = [2, 96], strides = [1, 1]} : vector<2x128xf32> to vector<2x96xf32>
    %337 = arith.negf %336 : vector<2x96xf32>
    %338 = math.exp %337 : vector<2x96xf32>
    %cst_105 = arith.constant 1.000000e+00 : f32
    %339 = vector.broadcast %cst_105 : f32 to vector<2x96xf32>
    %340 = arith.addf %339, %338 : vector<2x96xf32>
    %341 = arith.divf %339, %340 : vector<2x96xf32>
    %342 = vector.extract_strided_slice %335 {offsets = [0, 96], sizes = [2, 32], strides = [1, 1]} : vector<2x128xf32> to vector<2x32xf32>
    %343 = math.tanh %342 : vector<2x32xf32>
    %344 = vector.extract_strided_slice %341 {offsets = [0, 32], sizes = [2, 32], strides = [1, 1]} : vector<2x96xf32> to vector<2x32xf32>
    %345 = arith.mulf %344, %328 : vector<2x32xf32>
    %346 = vector.extract_strided_slice %341 {offsets = [0, 0], sizes = [2, 32], strides = [1, 1]} : vector<2x96xf32> to vector<2x32xf32>
    %347 = arith.mulf %346, %343 : vector<2x32xf32>
    %348 = arith.addf %345, %347 : vector<2x32xf32>
    %349 = vector.extract_strided_slice %341 {offsets = [0, 64], sizes = [2, 32], strides = [1, 1]} : vector<2x96xf32> to vector<2x32xf32>
    %350 = math.tanh %348 : vector<2x32xf32>
    %351 = arith.mulf %349, %350 : vector<2x32xf32>
    %c10_106 = arith.constant 10 : index
    %c0_107 = arith.constant 0 : index
    %352 = vector.load %arg8[%c10_106, %c0_107] : memref<16x32xf32, #tpu.memory_space<vmem>>, vector<2x32xf32>
    tpu.vector_store %arg8[%c10_106, %c0_107], %351 {strides = array<i32>} : memref<16x32xf32, #tpu.memory_space<vmem>>, vector<2x32xf32>,
    %c12_108 = arith.constant 12 : index
    %c0_109 = arith.constant 0 : index
    %353 = vector.load %arg2[%c12_108, %c0_109] : memref<16x128xf32, #tpu.memory_space<vmem>>, vector<2x128xf32>
    %cst_110 = arith.constant dense<0.000000e+00> : vector<2x128xf32>
    %354 = tpu.matmul %351, %1, %cst_110 {dimension_numbers = #tpu.dot_dimension_numbers<[1], [0], [0], [1], [0, 0, 1, 1], [], []>} : vector<2x32xf32>, vector<32x128xf32>, vector<2x128xf32> -> vector<2x128xf32>
    %355 = arith.addf %353, %354 : vector<2x128xf32>
    %356 = vector.extract_strided_slice %355 {offsets = [0, 0], sizes = [2, 96], strides = [1, 1]} : vector<2x128xf32> to vector<2x96xf32>
    %357 = arith.negf %356 : vector<2x96xf32>
    %358 = math.exp %357 : vector<2x96xf32>
    %cst_111 = arith.constant 1.000000e+00 : f32
    %359 = vector.broadcast %cst_111 : f32 to vector<2x96xf32>
    %360 = arith.addf %359, %358 : vector<2x96xf32>
    %361 = arith.divf %359, %360 : vector<2x96xf32>
    %362 = vector.extract_strided_slice %355 {offsets = [0, 96], sizes = [2, 32], strides = [1, 1]} : vector<2x128xf32> to vector<2x32xf32>
    %363 = math.tanh %362 : vector<2x32xf32>
    %364 = vector.extract_strided_slice %361 {offsets = [0, 32], sizes = [2, 32], strides = [1, 1]} : vector<2x96xf32> to vector<2x32xf32>
    %365 = arith.mulf %364, %348 : vector<2x32xf32>
    %366 = vector.extract_strided_slice %361 {offsets = [0, 0], sizes = [2, 32], strides = [1, 1]} : vector<2x96xf32> to vector<2x32xf32>
    %367 = arith.mulf %366, %363 : vector<2x32xf32>
    %368 = arith.addf %365, %367 : vector<2x32xf32>
    %369 = vector.extract_strided_slice %361 {offsets = [0, 64], sizes = [2, 32], strides = [1, 1]} : vector<2x96xf32> to vector<2x32xf32>
    %370 = math.tanh %368 : vector<2x32xf32>
    %371 = arith.mulf %369, %370 : vector<2x32xf32>
    %c12_112 = arith.constant 12 : index
    %c0_113 = arith.constant 0 : index
    %372 = vector.load %arg8[%c12_112, %c0_113] : memref<16x32xf32, #tpu.memory_space<vmem>>, vector<2x32xf32>
    tpu.vector_store %arg8[%c12_112, %c0_113], %371 {strides = array<i32>} : memref<16x32xf32, #tpu.memory_space<vmem>>, vector<2x32xf32>,
    %c14_114 = arith.constant 14 : index
    %c0_115 = arith.constant 0 : index
    %373 = vector.load %arg2[%c14_114, %c0_115] : memref<16x128xf32, #tpu.memory_space<vmem>>, vector<2x128xf32>
    %cst_116 = arith.constant dense<0.000000e+00> : vector<2x128xf32>
    %374 = tpu.matmul %371, %1, %cst_116 {dimension_numbers = #tpu.dot_dimension_numbers<[1], [0], [0], [1], [0, 0, 1, 1], [], []>} : vector<2x32xf32>, vector<32x128xf32>, vector<2x128xf32> -> vector<2x128xf32>
    %375 = arith.addf %373, %374 : vector<2x128xf32>
    %376 = vector.extract_strided_slice %375 {offsets = [0, 0], sizes = [2, 96], strides = [1, 1]} : vector<2x128xf32> to vector<2x96xf32>
    %377 = arith.negf %376 : vector<2x96xf32>
    %378 = math.exp %377 : vector<2x96xf32>
    %cst_117 = arith.constant 1.000000e+00 : f32
    %379 = vector.broadcast %cst_117 : f32 to vector<2x96xf32>
    %380 = arith.addf %379, %378 : vector<2x96xf32>
    %381 = arith.divf %379, %380 : vector<2x96xf32>
    %382 = vector.extract_strided_slice %375 {offsets = [0, 96], sizes = [2, 32], strides = [1, 1]} : vector<2x128xf32> to vector<2x32xf32>
    %383 = math.tanh %382 : vector<2x32xf32>
    %384 = vector.extract_strided_slice %381 {offsets = [0, 32], sizes = [2, 32], strides = [1, 1]} : vector<2x96xf32> to vector<2x32xf32>
    %385 = arith.mulf %384, %368 : vector<2x32xf32>
    %386 = vector.extract_strided_slice %381 {offsets = [0, 0], sizes = [2, 32], strides = [1, 1]} : vector<2x96xf32> to vector<2x32xf32>
    %387 = arith.mulf %386, %383 : vector<2x32xf32>
    %388 = arith.addf %385, %387 : vector<2x32xf32>
    %389 = vector.extract_strided_slice %381 {offsets = [0, 64], sizes = [2, 32], strides = [1, 1]} : vector<2x96xf32> to vector<2x32xf32>
    %390 = math.tanh %388 : vector<2x32xf32>
    %391 = arith.mulf %389, %390 : vector<2x32xf32>
    %c14_118 = arith.constant 14 : index
    %c0_119 = arith.constant 0 : index
    %392 = vector.load %arg8[%c14_118, %c0_119] : memref<16x32xf32, #tpu.memory_space<vmem>>, vector<2x32xf32>
    tpu.vector_store %arg8[%c14_118, %c0_119], %391 {strides = array<i32>} : memref<16x32xf32, #tpu.memory_space<vmem>>, vector<2x32xf32>,
    %c0_120 = arith.constant 0 : index
    %c0_121 = arith.constant 0 : index
    %393 = vector.load %arg8[%c0_120, %c0_121] : memref<16x32xf32, #tpu.memory_space<vmem>>, vector<16x32xf32>
    %c64 = arith.constant 64 : index
    %c0_122 = arith.constant 0 : index
    %394 = vector.load %arg3[%c64, %c0_122] : memref<552x128xf32, #tpu.memory_space<vmem>>, vector<64x128xf32>
    %c128 = arith.constant 128 : index
    %c0_123 = arith.constant 0 : index
    %395 = vector.load %arg3[%c128, %c0_123] : memref<552x128xf32, #tpu.memory_space<vmem>>, vector<128x128xf32>
    %c544 = arith.constant 544 : index
    %c0_124 = arith.constant 0 : index
    %396 = vector.load %arg3[%c544, %c0_124] : memref<552x128xf32, #tpu.memory_space<vmem>>, vector<1x128xf32>
    %c545 = arith.constant 545 : index
    %c0_125 = arith.constant 0 : index
    %397 = vector.load %arg3[%c545, %c0_125] : memref<552x128xf32, #tpu.memory_space<vmem>>, vector<1x128xf32>
    %cst_126 = arith.constant dense<0.000000e+00> : vector<16x16xf32>
    %398 = tpu.matmul %393, %172, %cst_126 {dimension_numbers = #tpu.dot_dimension_numbers<[1], [1], [0], [0], [0, 0, 1, 0], [], []>} : vector<16x32xf32>, vector<16x32xf32>, vector<16x16xf32> -> vector<16x16xf32>
    %399 = tpu.iota {dimensions = array<i32: 0>} : vector<16x16xi32>
    %400 = tpu.iota {dimensions = array<i32: 1>} : vector<16x16xi32>
    %c1_i32_127 = arith.constant 1 : i32
    %401 = vector.broadcast %c1_i32_127 : i32 to vector<16x16xi32>
    %402 = arith.andi %399, %401 : vector<16x16xi32>
    %c1_i32_128 = arith.constant 1 : i32
    %403 = vector.broadcast %c1_i32_128 : i32 to vector<16x16xi32>
    %404 = arith.andi %400, %403 : vector<16x16xi32>
    %405 = arith.cmpi eq, %402, %404 : vector<16x16xi32>
    %cst_129 = arith.constant 0xFF800000 : f32
    %406 = vector.broadcast %cst_129 : f32 to vector<16x16xf32>
    %407 = arith.select %405, %398, %406 : vector<16x16xi1>, vector<16x16xf32>
    %cst_130 = arith.constant dense<0xFF800000> : vector<16xf32>
    %408 = vector.multi_reduction <maximumf>, %407, %cst_130 [1] : vector<16x16xf32> to vector<16xf32>
    %409 = vector.shape_cast %408 : vector<16xf32> to vector<16x1xf32>
    %410 = vector.broadcast %409 : vector<16x1xf32> to vector<16x16xf32>
    %411 = arith.subf %407, %410 : vector<16x16xf32>
    %412 = math.exp %411 : vector<16x16xf32>
    %cst_131 = arith.constant dense<0.000000e+00> : vector<16xf32>
    %413 = vector.multi_reduction <add>, %412, %cst_131 [1] : vector<16x16xf32> to vector<16xf32>
    %414 = vector.shape_cast %413 : vector<16xf32> to vector<16x1xf32>
    %415 = vector.broadcast %414 : vector<16x1xf32> to vector<16x16xf32>
    %416 = arith.divf %412, %415 : vector<16x16xf32>
    %cst_132 = arith.constant dense<0.000000e+00> : vector<16x32xf32>
    %417 = tpu.matmul %416, %172, %cst_132 {dimension_numbers = #tpu.dot_dimension_numbers<[1], [0], [0], [1], [0, 0, 1, 1], [], []>} : vector<16x16xf32>, vector<16x32xf32>, vector<16x32xf32> -> vector<16x32xf32>
    %418 = tpu.concatenate %417, %393 in 1 : vector<16x32xf32>, vector<16x32xf32> -> vector<16x64xf32>
    %cst_133 = arith.constant dense<0.000000e+00> : vector<16x128xf32>
    %419 = tpu.matmul %418, %394, %cst_133 {dimension_numbers = #tpu.dot_dimension_numbers<[1], [0], [0], [1], [0, 0, 1, 1], [], []>} : vector<16x64xf32>, vector<64x128xf32>, vector<16x128xf32> -> vector<16x128xf32>
    %420 = vector.broadcast %396 : vector<1x128xf32> to vector<16x128xf32>
    %421 = arith.addf %419, %420 : vector<16x128xf32>
    %422 = math.tanh %421 : vector<16x128xf32>
    %cst_134 = arith.constant dense<0.000000e+00> : vector<16x128xf32>
    %423 = tpu.matmul %422, %395, %cst_134 {dimension_numbers = #tpu.dot_dimension_numbers<[1], [0], [0], [1], [0, 0, 1, 1], [], []>} : vector<16x128xf32>, vector<128x128xf32>, vector<16x128xf32> -> vector<16x128xf32>
    %424 = vector.broadcast %397 : vector<1x128xf32> to vector<16x128xf32>
    %425 = arith.addf %423, %424 : vector<16x128xf32>
    %426 = tpu.iota {dimensions = array<i32: 1>} : vector<16x128xi32>
    %427 = arith.sitofp %426 : vector<16x128xi32> to vector<16x128xf32>
    %c12_i32 = arith.constant 12 : i32
    %428 = vector.broadcast %c12_i32 : i32 to vector<16x128xi32>
    %429 = arith.cmpi slt, %426, %428 : vector<16x128xi32>
    %cst_135 = arith.constant 0xFF800000 : f32
    %430 = vector.broadcast %cst_135 : f32 to vector<16x128xf32>
    %431 = arith.select %429, %425, %430 : vector<16x128xi1>, vector<16x128xf32>
    %cst_136 = arith.constant dense<0xFF800000> : vector<16xf32>
    %432 = vector.multi_reduction <maximumf>, %431, %cst_136 [1] : vector<16x128xf32> to vector<16xf32>
    %433 = vector.shape_cast %432 : vector<16xf32> to vector<16x1xf32>
    %434 = vector.broadcast %433 : vector<16x1xf32> to vector<16x128xf32>
    %435 = arith.subf %431, %434 : vector<16x128xf32>
    %436 = math.exp %435 : vector<16x128xf32>
    %cst_137 = arith.constant dense<0.000000e+00> : vector<16xf32>
    %437 = vector.multi_reduction <add>, %436, %cst_137 [1] : vector<16x128xf32> to vector<16xf32>
    %438 = vector.shape_cast %437 : vector<16xf32> to vector<16x1xf32>
    %439 = math.log %438 : vector<16x1xf32>
    %440 = arith.addf %433, %439 : vector<16x1xf32>
    %441 = vector.broadcast %440 : vector<16x1xf32> to vector<16x128xf32>
    %442 = arith.subf %425, %441 : vector<16x128xf32>
    %c0_138 = arith.constant 0 : index
    %c0_139 = arith.constant 0 : index
    %443 = vector.load %arg5[%c0_138, %c0_139] : memref<16x128xf32, #tpu.memory_space<vmem>>, vector<16x128xf32>
    tpu.vector_store %arg5[%c0_138, %c0_139], %442 {strides = array<i32>} : memref<16x128xf32, #tpu.memory_space<vmem>>, vector<16x128xf32>,
    %444 = vector.broadcast %433 : vector<16x1xf32> to vector<16x128xf32>
    %445 = arith.cmpf oge, %431, %444 : vector<16x128xf32>
    %cst_140 = arith.constant 1.280000e+02 : f32
    %446 = vector.broadcast %cst_140 : f32 to vector<16x128xf32>
    %447 = arith.select %445, %427, %446 : vector<16x128xi1>, vector<16x128xf32>
    %cst_141 = arith.constant dense<0x7F800000> : vector<16xf32>
    %448 = vector.multi_reduction <minimumf>, %447, %cst_141 [1] : vector<16x128xf32> to vector<16xf32>
    %449 = vector.shape_cast %448 : vector<16xf32> to vector<16x1xf32>
    %450 = arith.fptosi %449 : vector<16x1xf32> to vector<16x1xi32>
    %c0_142 = arith.constant 0 : index
    %c0_143 = arith.constant 0 : index
    %451 = vector.load %arg6[%c0_142, %c0_143] : memref<16x1xi32, #tpu.memory_space<vmem>>, vector<16x1xi32>
    tpu.vector_store %arg6[%c0_142, %c0_143], %450 {strides = array<i32>} : memref<16x1xi32, #tpu.memory_space<vmem>>, vector<16x1xi32>,
    return
  }
  func.func @transform_0(%arg0: i32) -> (i32, i32) {
    %c0_i32 = arith.constant 0 : i32
    %c0_i32_0 = arith.constant 0 : i32
    %c0_i32_1 = arith.constant 0 : i32
    return %c0_i32, %c0_i32_0 : i32, i32
  }
  func.func @transform_1(%arg0: i32) -> (i32, i32) {
    %c0_i32 = arith.constant 0 : i32
    %c0_i32_0 = arith.constant 0 : i32
    %c0_i32_1 = arith.constant 0 : i32
    return %c0_i32, %c0_i32_0 : i32, i32
  }
  func.func @transform_2(%arg0: i32) -> (i32, i32) {
    %c0_i32 = arith.constant 0 : i32
    %c0_i32_0 = arith.constant 0 : i32
    %c0_i32_1 = arith.constant 0 : i32
    return %c0_i32, %c0_i32_0 : i32, i32
  }
  func.func @transform_3(%arg0: i32) -> (i32, i32) {
    %c0_i32 = arith.constant 0 : i32
    %c0_i32_0 = arith.constant 0 : i32
    %c0_i32_1 = arith.constant 0 : i32
    return %c0_i32, %c0_i32_0 : i32, i32
  }
  func.func @transform_4(%arg0: i32) -> (i32, i32) {
    %c0_i32 = arith.constant 0 : i32
    %c0_i32_0 = arith.constant 0 : i32
    %c0_i32_1 = arith.constant 0 : i32
    return %c0_i32, %c0_i32_0 : i32, i32
  }
  func.func @transform_5(%arg0: i32) -> (i32, i32) {
    %c0_i32 = arith.constant 0 : i32
    %c0_i32_0 = arith.constant 0 : i32
    %c0_i32_1 = arith.constant 0 : i32
    return %c0_i32, %c0_i32_0 : i32, i32
  }
}

</mosaic_0001>

<bundles_post_ra>
// kernel: nao_forward.1
= control target key start
LH: loop header
LB: loop body
LE: loop exit
PB: predicated region body
PF: predicated region fallthrough
CT: control target
= control target key end

     0   :  { %11 = vsyncpa [#allocation5], 0  ;;  %s2278_s0 = inlined_call_operand.vmem [shape: f32[16,128], index: 0, kind: input, shape index: {}]   ;;  %s2279_s1 = inlined_call_operand.vmem [shape: f32[16,128], index: 1, kind: input, shape index: {}]   ;;  %s2280_s2 = inlined_call_operand.hbm [shape: f32[552,128], index: 2, kind: input, shape index: {}]   ;;  %s2281_s3 = inlined_call_operand.vmem [shape: f32[2,1], index: 3, kind: output, shape index: {0}]   ;;  %s2282_s4 = inlined_call_operand.hbm [shape: f32[16,128], index: 4, kind: output, shape index: {1}]   ;;  %s2283_s5 = inlined_call_operand.vmem [shape: s32[16,1], index: 5, kind: output, shape index: {2}]  }
   0x1   :  { %12 = vsyncpa [#allocation6], 0  ;;  %s21_s20 = sshll.u32 %s2280_s2, 4  ;;  %s1931_s21 = smov [#allocation4]   ;;  %s22_s20 = int_to_ptr.hbm [resolvable:$true] %s21_s20 }
   0x2   :  { %s23_s22 = sshll.u32 %s1931_s21, 4  ;;  %s1932_s23 = smov 128   ;;  %s24_s22 = int_to_ptr.vmem [resolvable:$true] %s23_s22 }
   0x3   :  { %s1933_s24 = smov 8  }
   0x4   :  { %29 = dma.hbm_to_vmem [thread:$0]  %s22_s20, 8832, %s24_s22, [#allocation5], %s1932_s23, %s1932_s23, %s1933_s24  }
   0x5   :  { %1927 = dma.done.wait [#allocation5], 8832  }
   0x6   :  { %1928 = vsyncadd [#allocation5], 4294958464  ;;  %v1974_v0 = vld [vmem:[#allocation4 + $0x18] sm:$0xff]  ;;  %v1976_v1 = vld [vmem:[#allocation4 + $0x10] sm:$0xff]  ;;  %v1934_v4 = vmov 0.0   ;;  %s1935_s26 = smov 32  }
   0x7   :  { %59 = vmatpush.msra.mxu1 %v1974_v0  ;;  %v1979_v2 = vld [vmem:[#allocation4 + $0x8] sm:$0xff]  ;;  %192 = vmatpush.msra.mxu2 %v1974_v0  ;;  %v1985_v3 = vld [vmem:[#allocation4] sm:$0xff]  ;;  %s1936_s27 = smov 64   ;;  %vm109_vm4 = vcmask 254976   ;;  %vm43_vm5 = vcmask 261120   ;;  %s1633_s14 = sshll.u32 %s2282_s4, 4  ;;  %s1634_s14 = int_to_ptr.hbm [resolvable:$true] %s1633_s14 }
   0x8   :  { %258 = vmatpush.msra.mxu3 %v1974_v0  ;;  %v42_v5 = vld [vmem:[%s2278_s0] sm:$0x3]  ;;  %v111_v31 = vld [vmem:[%s2278_s0 + $0x2] sm:$0x3]  ;;  %v177_v57 = vld [vmem:[%s2278_s0 + $0x4] sm:$0x3] }
   0x9   :  { %60 = vmatpush.msra.mxu1 %v1976_v1  ;;  %193 = vmatpush.msra.mxu2 %v1976_v1 }
   0xa   :  { %259 = vmatpush.msra.mxu3 %v1976_v1 }
   0xb   :  { %61 = vmatpush.msra.mxu1 %v1979_v2  ;;  %194 = vmatpush.msra.mxu2 %v1979_v2 }
   0xc   :  { %260 = vmatpush.msra.mxu3 %v1979_v2 }
   0xd   :  { %62 = vmatpush.msra.mxu1 %v1985_v3  ;;  %195 = vmatpush.msra.mxu2 %v1985_v3 }
   0xe   :  { %63 = vmatmul.f32.vlgmr.msra.gmra.mxu1 %v1934_v4  ;;  %261 = vmatpush.msra.mxu3 %v1985_v3 }
   0xf   :  { %126 = vmatpush.msrb.mxu1 %v1974_v0  ;;  %324 = vmatpush.msrb.mxu2 %v1974_v0 }
  0x10   :  { %522 = vmatpush.msrb.mxu3 %v1974_v0 }
  0x11   :  { %127 = vmatpush.msrb.mxu1 %v1976_v1  ;;  %325 = vmatpush.msrb.mxu2 %v1976_v1 }
  0x12   :  { %523 = vmatpush.msrb.mxu3 %v1976_v1 }
  0x13   :  { %128 = vmatpush.msrb.mxu1 %v1979_v2  ;;  %326 = vmatpush.msrb.mxu2 %v1979_v2 }
  0x14   :  { %524 = vmatpush.msrb.mxu3 %v1979_v2 }
  0x15   :  { %129 = vmatpush.msrb.mxu1 %v1985_v3  ;;  %327 = vmatpush.msrb.mxu2 %v1985_v3 }
  0x16   :  { %525 = vmatpush.msrb.mxu3 %v1985_v3 }
  0x17   :  { %390 = vmatpush.msra.mxu1 %v1974_v0 }
  0x19   :  { %391 = vmatpush.msra.mxu1 %v1976_v1 }
  0x1b   :  { %392 = vmatpush.msra.mxu1 %v1979_v2 }
  0x1d   :  { %393 = vmatpush.msra.mxu1 %v1985_v3 }
  0x8b   :  { %v64_v6 = vpop.f32.mrf.mxu1 }
  0x8c   :  { %v67_v7 = vadd.f32 %v64_v6, %v42_v5 }
  0x8e   :  { %1715 = vtanh.f32 %v67_v7  ;;  %v1652_v9 = vmul.f32 -1.442695, %v67_v7 }
  0x90   :  { %1717 = vpow2.f32 %v1652_v9 }
  0x94   :  { %v1716_v8 = vpop.eup %1715 }
  0x95   :  { %90 = vrot.lane.b32.xlu0 %v1716_v8, %s1935_s26 }
  0x96   :  { %v1718_v10 = vpop.eup %1717 }
  0x97   :  { %v71_v11 = vadd.f32 1.0, %v1718_v10 }
  0x99   :  { %1719 = vrcp.f32 %v71_v11  ;;  %v83_v17 = vand.u32 2147483648, %v71_v11  ;;  %vm77_vm1 = vweird.f32 %v71_v11  ;;  %v81_v18 = vand.u32 2147483647, %v71_v11 }
  0x9b   :  { %v84_v20 = vor.u32 1.1754944e-38, %v83_v17  ;;  %vm82_vm3 = vcmp.eq.f32.partialorder %v81_v18, 8.507059e+37 }
  0x9f   :  { %v1720_v12 = vpop.eup %1719 }
  0xa0   :  { %v73_v13 = vmul.f32 %v1720_v12, %v71_v11  ;;  %vm78_vm0 = vweird.f32 %v1720_v12 }
  0xa1   :  { %vm79_vm2 = vmor %vm77_vm1, %vm78_vm0 }
  0xa2   :  { %v74_v14 = vsub.f32 1.0, %v73_v13 }
  0xa4   :  { %v75_v15 = vmul.f32 %v1720_v12, %v74_v14 }
  0xa6   :  { %v76_v16 = vadd.f32 %v1720_v12, %v75_v15 }
  0xa8   :  { %v80_v19 = vsel %vm79_vm2, %v1720_v12, %v76_v16 }
  0xa9   :  { %v85_v22 = vsel %vm82_vm3, %v84_v20, %v80_v19  ;;  %v243_v19 = vld [vmem:[%s2278_s0 + $0x6] sm:$0x3] }
  0xaa   :  { %v88_v24 = vmul.f32 0.0, %v85_v22 }
 0x107   :  { %v91_v21 = vpop.permute.xlu0 %90 }
 0x108   :  { %v93_v23 = vmul.f32 %v91_v21, %v85_v22 }
 0x10a   :  { %95 = vrot.lane.b32.xlu0 %v93_v23, %s1935_s26 }
 0x17c   :  { %v96_v25 = vpop.permute.xlu0 %95 }
 0x17d   :  { %v98_v26 = vadd.f32 %v96_v25, %v88_v24 }
 0x17f   :  { %1721 = vtanh.f32 %v98_v26 }
 0x185   :  { %v1722_v27 = vpop.eup %1721 }
 0x186   :  { %101 = vrot.lane.b32.xlu1 %v1722_v27, %s1935_s26 }
 0x1f8   :  { %v102_v28 = vpop.permute.xlu1 %101 }
 0x1f9   :  { %v104_v29 = vmul.f32 %v102_v28, %v85_v22 }
 0x1fb   :  { %106 = vrot.lane.b32.xlu1 %v104_v29, %s1936_s27 }
 0x26d   :  { %v107_v30 = vpop.permute.xlu1 %106 }
 0x26e   :  { %110 = vst.msk [vmem:[#allocation2] sm:$0x3] %vm109_vm4, %v107_v30  ;;  %1653 = vmatmul.msk.f32.vlgmr.msrb.gmra.mxu1 %vm43_vm5, %v107_v30 }
 0x2eb   :  { %v131_v32 = vpop.f32.mrf.mxu1 }
 0x2ec   :  { %v134_v33 = vadd.f32 %v131_v32, %v111_v31 }
 0x2ee   :  { %1723 = vtanh.f32 %v134_v33  ;;  %v1654_v35 = vmul.f32 -1.442695, %v134_v33 }
 0x2f0   :  { %1725 = vpow2.f32 %v1654_v35 }
 0x2f4   :  { %v1724_v34 = vpop.eup %1723 }
 0x2f5   :  { %157 = vrot.lane.b32.xlu2 %v1724_v34, %s1935_s26 }
 0x2f6   :  { %v1726_v36 = vpop.eup %1725 }
 0x2f7   :  { %v138_v37 = vadd.f32 1.0, %v1726_v36 }
 0x2f9   :  { %1727 = vrcp.f32 %v138_v37  ;;  %v150_v43 = vand.u32 2147483648, %v138_v37  ;;  %vm144_vm7 = vweird.f32 %v138_v37  ;;  %v148_v44 = vand.u32 2147483647, %v138_v37 }
 0x2fb   :  { %v151_v46 = vor.u32 1.1754944e-38, %v150_v43  ;;  %vm149_vm9 = vcmp.eq.f32.partialorder %v148_v44, 8.507059e+37 }
 0x2ff   :  { %v1728_v38 = vpop.eup %1727 }
 0x300   :  { %v140_v39 = vmul.f32 %v1728_v38, %v138_v37  ;;  %vm145_vm6 = vweird.f32 %v1728_v38 }
 0x301   :  { %vm146_vm8 = vmor %vm144_vm7, %vm145_vm6 }
 0x302   :  { %v141_v40 = vsub.f32 1.0, %v140_v39 }
 0x304   :  { %v142_v41 = vmul.f32 %v1728_v38, %v141_v40 }
 0x306   :  { %v143_v42 = vadd.f32 %v1728_v38, %v142_v41 }
 0x308   :  { %v147_v45 = vsel %vm146_vm8, %v1728_v38, %v143_v42 }
 0x309   :  { %v152_v48 = vsel %vm149_vm9, %v151_v46, %v147_v45  ;;  %v309_v45 = vld [vmem:[%s2278_s0 + $0x8] sm:$0x3] }
 0x30a   :  { %v155_v50 = vmul.f32 %v152_v48, %v98_v26 }
 0x34f   :  { %v158_v47 = vpop.permute.xlu2 %157 }
 0x350   :  { %v160_v49 = vmul.f32 %v158_v47, %v152_v48 }
 0x352   :  { %162 = vrot.lane.b32.xlu2 %v160_v49, %s1935_s26 }
 0x3ac   :  { %v163_v51 = vpop.permute.xlu2 %162 }
 0x3ad   :  { %v165_v52 = vadd.f32 %v163_v51, %v155_v50 }
 0x3af   :  { %1729 = vtanh.f32 %v165_v52 }
 0x3b5   :  { %v1730_v53 = vpop.eup %1729 }
 0x3b6   :  { %168 = vrot.lane.b32.xlu0 %v1730_v53, %s1935_s26 }
 0x428   :  { %v169_v54 = vpop.permute.xlu0 %168 }
 0x429   :  { %v171_v55 = vmul.f32 %v169_v54, %v152_v48 }
 0x42b   :  { %173 = vrot.lane.b32.xlu1 %v171_v55, %s1936_s27 }
 0x49d   :  { %v174_v56 = vpop.permute.xlu1 %173 }
 0x49e   :  { %176 = vst.msk [vmem:[#allocation2 + $0x2] sm:$0x3] %vm109_vm4, %v174_v56  ;;  %1655 = vmatmul.msk.f32.vlgmr.msra.gmra.mxu2 %vm43_vm5, %v174_v56 }
 0x49f   :  { %456 = vmatpush.msra.mxu2 %v1974_v0 }
 0x4a1   :  { %457 = vmatpush.msra.mxu2 %v1976_v1 }
 0x4a3   :  { %458 = vmatpush.msra.mxu2 %v1979_v2 }
 0x4a5   :  { %459 = vmatpush.msra.mxu2 %v1985_v3 }
 0x521   :  { %v197_v58 = vpop.f32.mrf.mxu2 }
 0x522   :  { %v200_v59 = vadd.f32 %v197_v58, %v177_v57 }
 0x524   :  { %1731 = vtanh.f32 %v200_v59  ;;  %v1656_v61 = vmul.f32 -1.442695, %v200_v59 }
 0x526   :  { %1733 = vpow2.f32 %v1656_v61 }
 0x52a   :  { %v1732_v60 = vpop.eup %1731 }
 0x52b   :  { %223 = vrot.lane.b32.xlu2 %v1732_v60, %s1935_s26 }
 0x52c   :  { %v1734_v62 = vpop.eup %1733 }
 0x52d   :  { %v204_v63 = vadd.f32 1.0, %v1734_v62 }
 0x52f   :  { %1735 = vrcp.f32 %v204_v63  ;;  %v216_v5 = vand.u32 2147483648, %v204_v63  ;;  %vm210_vm11 = vweird.f32 %v204_v63  ;;  %v214_v6 = vand.u32 2147483647, %v204_v63 }
 0x531   :  { %v217_v8 = vor.u32 1.1754944e-38, %v216_v5  ;;  %vm215_vm13 = vcmp.eq.f32.partialorder %v214_v6, 8.507059e+37 }
 0x535   :  { %v1736_v0 = vpop.eup %1735 }
 0x536   :  { %v206_v1 = vmul.f32 %v1736_v0, %v204_v63  ;;  %vm211_vm10 = vweird.f32 %v1736_v0 }
 0x537   :  { %vm212_vm12 = vmor %vm210_vm11, %vm211_vm10 }
 0x538   :  { %v207_v2 = vsub.f32 1.0, %v206_v1 }
 0x53a   :  { %v208_v4 = vmul.f32 %v1736_v0, %v207_v2 }
 0x53c   :  { %v209_v3 = vadd.f32 %v1736_v0, %v208_v4 }
 0x53e   :  { %v213_v7 = vsel %vm212_vm12, %v1736_v0, %v209_v3 }
 0x53f   :  { %v218_v10 = vsel %vm215_vm13, %v217_v8, %v213_v7  ;;  %v375_v7 = vld [vmem:[%s2278_s0 + $0xa] sm:$0x3] }
 0x540   :  { %v221_v12 = vmul.f32 %v218_v10, %v165_v52 }
 0x585   :  { %v224_v9 = vpop.permute.xlu2 %223 }
 0x586   :  { %v226_v11 = vmul.f32 %v224_v9, %v218_v10 }
 0x588   :  { %228 = vrot.lane.b32.xlu0 %v226_v11, %s1935_s26 }
 0x5fa   :  { %v229_v13 = vpop.permute.xlu0 %228 }
 0x5fb   :  { %v231_v14 = vadd.f32 %v229_v13, %v221_v12 }
 0x5fd   :  { %1737 = vtanh.f32 %v231_v14 }
 0x603   :  { %v1738_v15 = vpop.eup %1737 }
 0x604   :  { %234 = vrot.lane.b32.xlu1 %v1738_v15, %s1935_s26 }
 0x676   :  { %v235_v16 = vpop.permute.xlu1 %234 }
 0x677   :  { %v237_v17 = vmul.f32 %v235_v16, %v218_v10 }
 0x679   :  { %239 = vrot.lane.b32.xlu2 %v237_v17, %s1936_s27 }
 0x6d3   :  { %v240_v18 = vpop.permute.xlu2 %239 }
 0x6d4   :  { %242 = vst.msk [vmem:[#allocation2 + $0x4] sm:$0x3] %vm109_vm4, %v240_v18  ;;  %1657 = vmatmul.msk.f32.vlgmr.msra.gmra.mxu3 %vm43_vm5, %v240_v18 }
 0x757   :  { %v263_v20 = vpop.f32.mrf.mxu3 }
 0x758   :  { %v266_v21 = vadd.f32 %v263_v20, %v243_v19 }
 0x75a   :  { %1739 = vtanh.f32 %v266_v21  ;;  %v1658_v23 = vmul.f32 -1.442695, %v266_v21 }
 0x75c   :  { %1741 = vpow2.f32 %v1658_v23 }
 0x760   :  { %v1740_v22 = vpop.eup %1739 }
 0x761   :  { %289 = vrot.lane.b32.xlu0 %v1740_v22, %s1935_s26 }
 0x762   :  { %v1742_v24 = vpop.eup %1741 }
 0x763   :  { %v270_v25 = vadd.f32 1.0, %v1742_v24 }
 0x765   :  { %1743 = vrcp.f32 %v270_v25  ;;  %v282_v31 = vand.u32 2147483648, %v270_v25  ;;  %vm276_vm15 = vweird.f32 %v270_v25  ;;  %v280_v32 = vand.u32 2147483647, %v270_v25 }
 0x767   :  { %v283_v34 = vor.u32 1.1754944e-38, %v282_v31  ;;  %vm281_vm1 = vcmp.eq.f32.partialorder %v280_v32, 8.507059e+37 }
 0x76b   :  { %v1744_v26 = vpop.eup %1743 }
 0x76c   :  { %v272_v27 = vmul.f32 %v1744_v26, %v270_v25  ;;  %vm277_vm14 = vweird.f32 %v1744_v26 }
 0x76d   :  { %vm278_vm0 = vmor %vm276_vm15, %vm277_vm14 }
 0x76e   :  { %v273_v28 = vsub.f32 1.0, %v272_v27 }
 0x770   :  { %v274_v29 = vmul.f32 %v1744_v26, %v273_v28 }
 0x772   :  { %v275_v30 = vadd.f32 %v1744_v26, %v274_v29 }
 0x774   :  { %v279_v33 = vsel %vm278_vm0, %v1744_v26, %v275_v30 }
 0x775   :  { %v284_v36 = vsel %vm281_vm1, %v283_v34, %v279_v33  ;;  %v441_v33 = vld [vmem:[%s2278_s0 + $0xc] sm:$0x3] }
 0x776   :  { %v287_v38 = vmul.f32 %v284_v36, %v231_v14 }
 0x7d3   :  { %v290_v35 = vpop.permute.xlu0 %289 }
 0x7d4   :  { %v292_v37 = vmul.f32 %v290_v35, %v284_v36 }
 0x7d6   :  { %294 = vrot.lane.b32.xlu1 %v292_v37, %s1935_s26 }
 0x848   :  { %v295_v39 = vpop.permute.xlu1 %294 }
 0x849   :  { %v297_v40 = vadd.f32 %v295_v39, %v287_v38 }
 0x84b   :  { %1745 = vtanh.f32 %v297_v40 }
 0x851   :  { %v1746_v41 = vpop.eup %1745 }
 0x852   :  { %300 = vrot.lane.b32.xlu2 %v1746_v41, %s1935_s26 }
 0x8ac   :  { %v301_v42 = vpop.permute.xlu2 %300 }
 0x8ad   :  { %v303_v43 = vmul.f32 %v301_v42, %v284_v36 }
 0x8af   :  { %305 = vrot.lane.b32.xlu0 %v303_v43, %s1936_s27 }
 0x921   :  { %v306_v44 = vpop.permute.xlu0 %305 }
 0x922   :  { %308 = vst.msk [vmem:[#allocation2 + $0x6] sm:$0x3] %vm109_vm4, %v306_v44  ;;  %1659 = vmatmul.msk.f32.vlgmr.msrb.gmra.mxu2 %vm43_vm5, %v306_v44 }
 0x9a5   :  { %v329_v46 = vpop.f32.mrf.mxu2 }
 0x9a6   :  { %v332_v47 = vadd.f32 %v329_v46, %v309_v45 }
 0x9a8   :  { %1747 = vtanh.f32 %v332_v47  ;;  %v1660_v49 = vmul.f32 -1.442695, %v332_v47 }
 0x9aa   :  { %1749 = vpow2.f32 %v1660_v49 }
 0x9ae   :  { %v1748_v48 = vpop.eup %1747 }
 0x9af   :  { %355 = vrot.lane.b32.xlu1 %v1748_v48, %s1935_s26 }
 0x9b0   :  { %v1750_v50 = vpop.eup %1749 }
 0x9b1   :  { %v336_v51 = vadd.f32 1.0, %v1750_v50 }
 0x9b3   :  { %1751 = vrcp.f32 %v336_v51  ;;  %v348_v57 = vand.u32 2147483648, %v336_v51  ;;  %vm342_vm3 = vweird.f32 %v336_v51  ;;  %v346_v58 = vand.u32 2147483647, %v336_v51 }
 0x9b5   :  { %v349_v60 = vor.u32 1.1754944e-38, %v348_v57  ;;  %vm347_vm7 = vcmp.eq.f32.partialorder %v346_v58, 8.507059e+37 }
 0x9b9   :  { %v1752_v52 = vpop.eup %1751 }
 0x9ba   :  { %v338_v53 = vmul.f32 %v1752_v52, %v336_v51  ;;  %vm343_vm2 = vweird.f32 %v1752_v52 }
 0x9bb   :  { %vm344_vm6 = vmor %vm342_vm3, %vm343_vm2 }
 0x9bc   :  { %v339_v54 = vsub.f32 1.0, %v338_v53 }
 0x9be   :  { %v340_v55 = vmul.f32 %v1752_v52, %v339_v54 }
 0x9c0   :  { %v341_v56 = vadd.f32 %v1752_v52, %v340_v55 }
 0x9c2   :  { %v345_v59 = vsel %vm344_vm6, %v1752_v52, %v341_v56 }
 0x9c3   :  { %v350_v62 = vsel %vm347_vm7, %v349_v60, %v345_v59  ;;  %v507_v59 = vld [vmem:[%s2278_s0 + $0xe] sm:$0x3] }
 0x9c4   :  { %v353_v0 = vmul.f32 %v350_v62, %v297_v40 }
 0xa21   :  { %v356_v61 = vpop.permute.xlu1 %355 }
 0xa22   :  { %v358_v63 = vmul.f32 %v356_v61, %v350_v62 }
 0xa24   :  { %360 = vrot.lane.b32.xlu2 %v358_v63, %s1935_s26 }
 0xa7e   :  { %v361_v1 = vpop.permute.xlu2 %360 }
 0xa7f   :  { %v363_v2 = vadd.f32 %v361_v1, %v353_v0 }
 0xa81   :  { %1753 = vtanh.f32 %v363_v2 }
 0xa87   :  { %v1754_v4 = vpop.eup %1753 }
 0xa88   :  { %366 = vrot.lane.b32.xlu0 %v1754_v4, %s1935_s26 }
 0xafa   :  { %v367_v3 = vpop.permute.xlu0 %366 }
 0xafb   :  { %v369_v5 = vmul.f32 %v367_v3, %v350_v62 }
 0xafd   :  { %371 = vrot.lane.b32.xlu1 %v369_v5, %s1936_s27 }
 0xb6f   :  { %v372_v6 = vpop.permute.xlu1 %371 }
 0xb70   :  { %374 = vst.msk [vmem:[#allocation2 + $0x8] sm:$0x3] %vm109_vm4, %v372_v6  ;;  %1661 = vmatmul.msk.f32.vlgmr.msra.gmra.mxu1 %vm43_vm5, %v372_v6 }
 0xbed   :  { %v395_v8 = vpop.f32.mrf.mxu1 }
 0xbee   :  { %v398_v9 = vadd.f32 %v395_v8, %v375_v7 }
 0xbf0   :  { %1755 = vtanh.f32 %v398_v9  ;;  %v1662_v11 = vmul.f32 -1.442695, %v398_v9 }
 0xbf2   :  { %1757 = vpow2.f32 %v1662_v11 }
 0xbf6   :  { %v1756_v10 = vpop.eup %1755 }
 0xbf7   :  { %421 = vrot.lane.b32.xlu2 %v1756_v10, %s1935_s26 }
 0xbf8   :  { %v1758_v12 = vpop.eup %1757 }
 0xbf9   :  { %v402_v13 = vadd.f32 1.0, %v1758_v12 }
 0xbfb   :  { %1759 = vrcp.f32 %v402_v13  ;;  %v414_v19 = vand.u32 2147483648, %v402_v13  ;;  %vm408_vm9 = vweird.f32 %v402_v13  ;;  %v412_v20 = vand.u32 2147483647, %v402_v13 }
 0xbfd   :  { %v415_v22 = vor.u32 1.1754944e-38, %v414_v19  ;;  %vm413_vm11 = vcmp.eq.f32.partialorder %v412_v20, 8.507059e+37 }
 0xc01   :  { %v1760_v14 = vpop.eup %1759 }
 0xc02   :  { %v404_v15 = vmul.f32 %v1760_v14, %v402_v13  ;;  %vm409_vm8 = vweird.f32 %v1760_v14 }
 0xc03   :  { %vm410_vm10 = vmor %vm408_vm9, %vm409_vm8 }
 0xc04   :  { %v405_v16 = vsub.f32 1.0, %v404_v15 }
 0xc06   :  { %v406_v17 = vmul.f32 %v1760_v14, %v405_v16 }
 0xc08   :  { %v407_v18 = vadd.f32 %v1760_v14, %v406_v17 }
 0xc0a   :  { %v411_v21 = vsel %vm410_vm10, %v1760_v14, %v407_v18  ;;  %v2082_v14 = vld [vmem:[#allocation2] sm:$0xff] }
 0xc0b   :  { %v416_v24 = vsel %vm413_vm11, %v415_v22, %v411_v21  ;;  %v575_v15 = vmul.f32 %v2082_v14, %v2082_v14 }
 0xc0c   :  { %v419_v26 = vmul.f32 %v416_v24, %v363_v2 }
 0xc0d   :  { %v577_v16 = vsel %vm43_vm5, %v575_v15, 0.0 }
 0xc51   :  { %v422_v23 = vpop.permute.xlu2 %421 }
 0xc52   :  { %v424_v25 = vmul.f32 %v422_v23, %v416_v24 }
 0xc54   :  { %426 = vrot.lane.b32.xlu0 %v424_v25, %s1935_s26 }
 0xcc6   :  { %v427_v27 = vpop.permute.xlu0 %426 }
 0xcc7   :  { %v429_v28 = vadd.f32 %v427_v27, %v419_v26 }
 0xcc9   :  { %1761 = vtanh.f32 %v429_v28 }
 0xccf   :  { %v1762_v29 = vpop.eup %1761 }
 0xcd0   :  { %432 = vrot.lane.b32.xlu1 %v1762_v29, %s1935_s26 }
 0xd42   :  { %v433_v30 = vpop.permute.xlu1 %432 }
 0xd43   :  { %v435_v31 = vmul.f32 %v433_v30, %v416_v24 }
 0xd45   :  { %437 = vrot.lane.b32.xlu2 %v435_v31, %s1936_s27  ;;  %v733_v31 = vld [vmem:[#allocation4 + $0x198] sm:$0xff] }
 0xd46   :  { %779 = vmatpush.msrb.mxu1 %v733_v31 }
 0xd9f   :  { %v438_v32 = vpop.permute.xlu2 %437 }
 0xda0   :  { %440 = vst.msk [vmem:[#allocation2 + $0xa] sm:$0x3] %vm109_vm4, %v438_v32  ;;  %1663 = vmatmul.msk.f32.vlgmr.msra.gmra.mxu2 %vm43_vm5, %v438_v32  ;;  %v749_v32 = vld [vmem:[#allocation4 + $0x218] sm:$0xff] }
 0xda1   :  { %801 = vmatpush.msrb.mxu2 %v749_v32 }
 0xe23   :  { %v461_v34 = vpop.f32.mrf.mxu2 }
 0xe24   :  { %v464_v35 = vadd.f32 %v461_v34, %v441_v33  ;;  %v732_v34 = vld [vmem:[#allocation4 + $0x190] sm:$0xff] }
 0xe25   :  { %780 = vmatpush.msrb.mxu1 %v732_v34 }
 0xe26   :  { %1763 = vtanh.f32 %v464_v35  ;;  %v1664_v37 = vmul.f32 -1.442695, %v464_v35  ;;  %v748_v35 = vld [vmem:[#allocation4 + $0x210] sm:$0xff] }
 0xe27   :  { %802 = vmatpush.msrb.mxu2 %v748_v35 }
 0xe28   :  { %1765 = vpow2.f32 %v1664_v37  ;;  %v747_v37 = vld [vmem:[#allocation4 + $0x208] sm:$0xff] }
 0xe29   :  { %803 = vmatpush.msrb.mxu2 %v747_v37 }
 0xe2c   :  { %v1764_v36 = vpop.eup %1763 }
 0xe2d   :  { %487 = vrot.lane.b32.xlu0 %v1764_v36, %s1935_s26  ;;  %v731_v36 = vld [vmem:[#allocation4 + $0x188] sm:$0xff] }
 0xe2e   :  { %v1766_v38 = vpop.eup %1765  ;;  %781 = vmatpush.msrb.mxu1 %v731_v36 }
 0xe2f   :  { %v468_v39 = vadd.f32 1.0, %v1766_v38 }
 0xe31   :  { %1767 = vrcp.f32 %v468_v39  ;;  %v480_v45 = vand.u32 2147483648, %v468_v39  ;;  %vm474_vm13 = vweird.f32 %v468_v39  ;;  %v478_v46 = vand.u32 2147483647, %v468_v39 }
 0xe33   :  { %v481_v48 = vor.u32 1.1754944e-38, %v480_v45  ;;  %vm479_vm15 = vcmp.eq.f32.partialorder %v478_v46, 8.507059e+37  ;;  %v744_v45 = vld [vmem:[#allocation4 + $0x1f0] sm:$0xff]  ;;  %v727_v46 = vld [vmem:[#allocation4 + $0x168] sm:$0xff] }
 0xe37   :  { %v1768_v40 = vpop.eup %1767 }
 0xe38   :  { %v470_v41 = vmul.f32 %v1768_v40, %v468_v39  ;;  %vm475_vm12 = vweird.f32 %v1768_v40  ;;  %v730_v39 = vld [vmem:[#allocation4 + $0x180] sm:$0xff] }
 0xe39   :  { %vm476_vm14 = vmor %vm474_vm13, %vm475_vm12  ;;  %782 = vmatpush.msrb.mxu1 %v730_v39 }
 0xe3a   :  { %v471_v42 = vsub.f32 1.0, %v470_v41  ;;  %v729_v41 = vld [vmem:[#allocation4 + $0x178] sm:$0xff] }
 0xe3b   :  { %783 = vmatpush.msrb.mxu1 %v729_v41 }
 0xe3c   :  { %v472_v43 = vmul.f32 %v1768_v40, %v471_v42  ;;  %v745_v42 = vld [vmem:[#allocation4 + $0x1f8] sm:$0xff] }
 0xe3e   :  { %v473_v44 = vadd.f32 %v1768_v40, %v472_v43 }
 0xe40   :  { %v477_v47 = vsel %vm476_vm14, %v1768_v40, %v473_v44  ;;  %v746_v40 = vld [vmem:[#allocation4 + $0x200] sm:$0xff]  ;;  %v728_v44 = vld [vmem:[#allocation4 + $0x170] sm:$0xff] }
 0xe41   :  { %v482_v50 = vsel %vm479_vm15, %v481_v48, %v477_v47  ;;  %804 = vmatpush.msrb.mxu2 %v746_v40  ;;  %784 = vmatpush.msrb.mxu1 %v728_v44  ;;  %v743_v47 = vld [vmem:[#allocation4 + $0x1e8] sm:$0xff] }
 0xe42   :  { %v485_v52 = vmul.f32 %v482_v50, %v429_v28 }
 0xe43   :  { %805 = vmatpush.msrb.mxu2 %v745_v42  ;;  %785 = vmatpush.msrb.mxu1 %v727_v46 }
 0xe45   :  { %806 = vmatpush.msrb.mxu2 %v744_v45 }
 0xe47   :  { %807 = vmatpush.msrb.mxu2 %v743_v47 }
 0xe9f   :  { %v488_v49 = vpop.permute.xlu0 %487 }
 0xea0   :  { %v490_v51 = vmul.f32 %v488_v49, %v482_v50  ;;  %v726_v49 = vld [vmem:[#allocation4 + $0x160] sm:$0xff] }
 0xea1   :  { %786 = vmatpush.msrb.mxu1 %v726_v49 }
 0xea2   :  { %492 = vrot.lane.b32.xlu1 %v490_v51, %s1935_s26  ;;  %v725_v51 = vld [vmem:[#allocation4 + $0x158] sm:$0xff] }
 0xea3   :  { %787 = vmatpush.msrb.mxu1 %v725_v51 }
 0xf14   :  { %v493_v53 = vpop.permute.xlu1 %492 }
 0xf15   :  { %v495_v54 = vadd.f32 %v493_v53, %v485_v52  ;;  %v741_v52 = vld [vmem:[#allocation4 + $0x1d8] sm:$0xff]  ;;  %v724_v53 = vld [vmem:[#allocation4 + $0x150] sm:$0xff] }
 0xf16   :  { %788 = vmatpush.msrb.mxu1 %v724_v53 }
 0xf17   :  { %1769 = vtanh.f32 %v495_v54 }
 0xf1d   :  { %v1770_v55 = vpop.eup %1769 }
 0xf1e   :  { %498 = vrot.lane.b32.xlu2 %v1770_v55, %s1935_s26 }
 0xf78   :  { %v499_v56 = vpop.permute.xlu2 %498 }
 0xf79   :  { %v501_v57 = vmul.f32 %v499_v56, %v482_v50  ;;  %v742_v50 = vld [vmem:[#allocation4 + $0x1e0] sm:$0xff] }
 0xf7a   :  { %808 = vmatpush.msrb.mxu2 %v742_v50 }
 0xf7b   :  { %503 = vrot.lane.b32.xlu0 %v501_v57, %s1936_s27  ;;  %v723_v57 = vld [vmem:[#allocation4 + $0x148] sm:$0xff] }
 0xf7c   :  { %809 = vmatpush.msrb.mxu2 %v741_v52  ;;  %789 = vmatpush.msrb.mxu1 %v723_v57 }
 0xfed   :  { %v504_v58 = vpop.permute.xlu0 %503 }
 0xfee   :  { %506 = vst.msk [vmem:[#allocation2 + $0xc] sm:$0x3] %vm109_vm4, %v504_v58  ;;  %1665 = vmatmul.msk.f32.vlgmr.msrb.gmra.mxu3 %vm43_vm5, %v504_v58  ;;  %v739_v58 = vld [vmem:[#allocation4 + $0x1c8] sm:$0xff] }
0x1071   :  { %v527_v60 = vpop.f32.mrf.mxu3 }
0x1072   :  { %v530_v61 = vadd.f32 %v527_v60, %v507_v59  ;;  %v722_v60 = vld [vmem:[#allocation4 + $0x140] sm:$0xff] }
0x1073   :  { %790 = vmatpush.msrb.mxu1 %v722_v60 }
0x1074   :  { %1771 = vtanh.f32 %v530_v61  ;;  %v1666_v63 = vmul.f32 -1.442695, %v530_v61  ;;  %v738_v61 = vld [vmem:[#allocation4 + $0x1c0] sm:$0xff] }
0x1076   :  { %1773 = vpow2.f32 %v1666_v63  ;;  %v721_v63 = vld [vmem:[#allocation4 + $0x138] sm:$0xff] }
0x1077   :  { %791 = vmatpush.msrb.mxu1 %v721_v63 }
0x107a   :  { %v1772_v62 = vpop.eup %1771 }
0x107b   :  { %553 = vrot.lane.b32.xlu1 %v1772_v62, %s1935_s26 }
0x107c   :  { %v1774_v0 = vpop.eup %1773 }
0x107d   :  { %v534_v1 = vadd.f32 1.0, %v1774_v0  ;;  %v737_v0 = vld [vmem:[#allocation4 + $0x1b8] sm:$0xff] }
0x107f   :  { %1775 = vrcp.f32 %v534_v1  ;;  %v546_v7 = vand.u32 2147483648, %v534_v1  ;;  %vm540_vm1 = vweird.f32 %v534_v1  ;;  %v544_v8 = vand.u32 2147483647, %v534_v1 }
0x1081   :  { %v547_v10 = vor.u32 1.1754944e-38, %v546_v7  ;;  %vm545_vm3 = vcmp.eq.f32.partialorder %v544_v8, 8.507059e+37  ;;  %v718_v7 = vld [vmem:[#allocation4 + $0x120] sm:$0xff] }
0x1082   :  { %v734_v8 = vld [vmem:[#allocation4 + $0x1a0] sm:$0xff] }
0x1085   :  { %v1776_v2 = vpop.eup %1775 }
0x1086   :  { %v536_v4 = vmul.f32 %v1776_v2, %v534_v1  ;;  %vm541_vm0 = vweird.f32 %v1776_v2 }
0x1087   :  { %vm542_vm2 = vmor %vm540_vm1, %vm541_vm0 }
0x1088   :  { %v537_v3 = vsub.f32 1.0, %v536_v4  ;;  %v736_v4 = vld [vmem:[#allocation4 + $0x1b0] sm:$0xff] }
0x108a   :  { %v538_v5 = vmul.f32 %v1776_v2, %v537_v3  ;;  %v719_v3 = vld [vmem:[#allocation4 + $0x128] sm:$0xff] }
0x108c   :  { %v539_v6 = vadd.f32 %v1776_v2, %v538_v5  ;;  %v735_v5 = vld [vmem:[#allocation4 + $0x1a8] sm:$0xff] }
0x108e   :  { %v543_v9 = vsel %vm542_vm2, %v1776_v2, %v539_v6  ;;  %v720_v2 = vld [vmem:[#allocation4 + $0x130] sm:$0xff] }
0x108f   :  { %v548_v12 = vsel %vm545_vm3, %v547_v10, %v543_v9  ;;  %792 = vmatpush.msrb.mxu1 %v720_v2 }
0x1090   :  { %v551_v17 = vmul.f32 %v548_v12, %v495_v54  ;;  %v740_v54 = vld [vmem:[#allocation4 + $0x1d0] sm:$0xff] }
0x1091   :  { %810 = vmatpush.msrb.mxu2 %v740_v54  ;;  %793 = vmatpush.msrb.mxu1 %v719_v3 }
0x1093   :  { %811 = vmatpush.msrb.mxu2 %v739_v58  ;;  %794 = vmatpush.msrb.mxu1 %v718_v7 }
0x1095   :  { %812 = vmatpush.msrb.mxu2 %v738_v61 }
0x1097   :  { %813 = vmatpush.msrb.mxu2 %v737_v0 }
0x1099   :  { %814 = vmatpush.msrb.mxu2 %v736_v4 }
0x109b   :  { %815 = vmatpush.msrb.mxu2 %v735_v5 }
0x109d   :  { %816 = vmatpush.msrb.mxu2 %v734_v8 }
0x10ed   :  { %v554_v11 = vpop.permute.xlu1 %553 }
0x10ee   :  { %v556_v13 = vmul.f32 %v554_v11, %v548_v12 }
0x10f0   :  { %558 = vrot.lane.b32.xlu2 %v556_v13, %s1935_s26 }
0x1119   :  { %578 = vadd.xlane.f32.xlu2 %v577_v16 }
0x114a   :  { %v559_v18 = vpop.permute.xlu2 %558 }
0x114b   :  { %v561_v19 = vadd.f32 %v559_v18, %v551_v17 }
0x114d   :  { %1777 = vtanh.f32 %v561_v19 }
0x1153   :  { %v1778_v20 = vpop.eup %1777 }
0x1154   :  { %564 = vrot.lane.b32.xlu0 %v1778_v20, %s1935_s26 }
0x118c   :  { %v579_v27 = vpop.xlane.xlu2 %578 }
0x118d   :  { %1779 = vrsqrt.f32 %v579_v27  ;;  %vm590_vm6 = vcmp.eq.f32.partialorder %v579_v27, inf  ;;  %v593_v56 = vand.u32 2147483648, %v579_v27  ;;  %vm592_vm7 = vcmp.eq.f32.partialorder %v579_v27, 0.0 }
0x1193   :  { %v1780_v28 = vpop.eup %1779 }
0x1194   :  { %v584_v29 = vmul.f32 %v1780_v28, %v579_v27 }
0x1196   :  { %v585_v30 = vmul.f32 %v1780_v28, %v584_v29 }
0x1198   :  { %v586_v33 = vmul.f32 0.5, %v585_v30 }
0x119a   :  { %v587_v38 = vsub.f32 1.5, %v586_v33 }
0x119c   :  { %v588_v43 = vmul.f32 %v1780_v28, %v587_v38 }
0x119e   :  { %v589_v48 = vmul.f32 %v588_v43, %v579_v27 }
0x11a0   :  { %v591_v55 = vsel %vm590_vm6, %v579_v27, %v589_v48 }
0x11a1   :  { %v594_v59 = vsel %vm592_vm7, %v593_v56, %v591_v55 }
0x11a2   :  { %v607_v1 = vmax.f32 %v594_v59, 1e-12 }
0x11a4   :  { %v620_v27 = vand.u32 2147483648, %v607_v1  ;;  %vm614_vm11 = vweird.f32 %v607_v1  ;;  %v618_v28 = vand.u32 2147483647, %v607_v1 }
0x11a6   :  { %v621_v33 = vor.u32 1.1754944e-38, %v620_v27  ;;  %vm619_vm13 = vcmp.eq.f32.partialorder %v618_v28, 8.507059e+37 }
0x11c6   :  { %v565_v21 = vpop.permute.xlu0 %564 }
0x11c7   :  { %v567_v22 = vmul.f32 %v565_v21, %v548_v12 }
0x11c9   :  { %569 = vrot.lane.b32.xlu1 %v567_v22, %s1936_s27 }
0x123b   :  { %v570_v23 = vpop.permute.xlu1 %569 }
0x123c   :  { %572 = vst.msk [vmem:[#allocation2 + $0xe] sm:$0x3] %vm109_vm4, %v570_v23 }
0x1243   :  { %v2090_v24 = vld [vmem:[#allocation2 + $0x8] sm:$0xff] }
0x1244   :  { %v576_v25 = vmul.f32 %v2090_v24, %v2090_v24 }
0x1246   :  { %v580_v26 = vsel %vm43_vm5, %v576_v25, 0.0  ;;  %v639_v25 = vlaneseq }
0x1247   :  { %581 = vadd.xlane.f32.xlu0 %v580_v26 }
0x1248   :  { %v640_v30 = vshrl.u32 %v639_v25, 7 }
0x124a   :  { %v641_v34 = vadd.s32 8, %v640_v30  ;;  %v2096_v38 = vand.u32 1, %v640_v30 }
0x124c   :  { %v2098_v41 = vand.u32 1, %v641_v34  ;;  %vm644_vm1 = vcmp.eq.s32.totalorder %v2096_v38, 0  ;;  %vm662_vm2 = vcmp.eq.s32.totalorder %v2096_v38, 1 }
0x124e   :  { %vm645_vm6 = vcmp.eq.s32.totalorder %v2098_v41, 0  ;;  %vm663_vm7 = vcmp.eq.s32.totalorder %v2098_v41, 1 }
0x12ba   :  { %v582_v62 = vpop.xlane.xlu0 %581 }
0x12bb   :  { %1781 = vrsqrt.f32 %v582_v62  ;;  %vm602_vm8 = vcmp.eq.f32.partialorder %v582_v62, inf  ;;  %v605_v18 = vand.u32 2147483648, %v582_v62  ;;  %vm604_vm9 = vcmp.eq.f32.partialorder %v582_v62, 0.0 }
0x12bc   :  { %1783 = vrcp.f32 %v607_v1 }
0x12c1   :  { %v1782_v6 = vpop.eup %1781 }
0x12c2   :  { %v596_v9 = vmul.f32 %v1782_v6, %v582_v62  ;;  %v1784_v11 = vpop.eup %1783 }
0x12c3   :  { %v610_v15 = vmul.f32 %v1784_v11, %v607_v1  ;;  %vm615_vm10 = vweird.f32 %v1784_v11 }
0x12c4   :  { %v597_v10 = vmul.f32 %v1782_v6, %v596_v9  ;;  %vm616_vm12 = vmor %vm614_vm11, %vm615_vm10  ;;  %v2113_v9 = vld [vmem:[#allocation4 + $0x38] sm:$0xff] }
0x12c5   :  { %v611_v19 = vsub.f32 1.0, %v610_v15  ;;  %855 = vmatpush.msra.mxu3 %v2113_v9  ;;  %v715_v15 = vld [vmem:[#allocation4 + $0x108] sm:$0xff] }
0x12c6   :  { %v598_v12 = vmul.f32 0.5, %v597_v10  ;;  %v717_v10 = vld [vmem:[#allocation4 + $0x118] sm:$0xff] }
0x12c7   :  { %v612_v23 = vmul.f32 %v1784_v11, %v611_v19  ;;  %769 = vmatpush.msra.mxu0 %v717_v10 }
0x12c8   :  { %v599_v13 = vsub.f32 1.5, %v598_v12  ;;  %v716_v12 = vld [vmem:[#allocation4 + $0x110] sm:$0xff] }
0x12c9   :  { %v613_v26 = vadd.f32 %v1784_v11, %v612_v23  ;;  %770 = vmatpush.msra.mxu0 %v716_v12 }
0x12ca   :  { %v600_v16 = vmul.f32 %v1782_v6, %v599_v13  ;;  %v2118_v13 = vld [vmem:[#allocation4 + $0x28] sm:$0xff] }
0x12cb   :  { %v617_v32 = vsel %vm616_vm12, %v1784_v11, %v613_v26  ;;  %v2115_v11 = vld [vmem:[#allocation4 + $0x30] sm:$0xff]  ;;  %771 = vmatpush.msra.mxu0 %v715_v15  ;;  %v1712_v15 = vld [vmem:[#allocation4 + $0x224] ss:$0 sm:$0xff] }
0x12cc   :  { %v601_v17 = vmul.f32 %v600_v16, %v582_v62  ;;  %v622_v37 = vsel %vm619_vm13, %v621_v33, %v617_v32  ;;  %856 = vmatpush.msra.mxu3 %v2115_v11  ;;  %v2121_v16 = vld [vmem:[#allocation4 + $0x20] sm:$0xff] }
0x12cd   :  { %v623_v43 = vmul.f32 %v622_v37, %v2082_v14 }
0x12ce   :  { %v603_v20 = vsel %vm602_vm8, %v582_v62, %v601_v17  ;;  %vm680_vm8 = vcmask 1040384   ;;  %v714_v17 = vld [vmem:[#allocation4 + $0x100] sm:$0xff]  ;;  %857 = vmatpush.msra.mxu3 %v2118_v13 }
0x12cf   :  { %v606_v21 = vsel %vm604_vm9, %v605_v18, %v603_v20  ;;  %v650_v48 = vsel %vm644_vm1, %v623_v43, 0.0  ;;  %v668_v49 = vsel %vm662_vm2, %v623_v43, 0.0  ;;  %772 = vmatpush.msra.mxu0 %v714_v17 }
0x12d0   :  { %v608_v22 = vmax.f32 %v606_v21, 1e-12  ;;  %v652_v51 = vsel %vm43_vm5, %v650_v48, 0.0  ;;  %v670_v53 = vsel %vm43_vm5, %v668_v49, 0.0  ;;  %858 = vmatpush.msra.mxu3 %v2121_v16  ;;  %v842_v49 = vld [vmem:[%s2279_s1] sm:$0x3] }
0x12d1   :  { %924 = vmatpush.msrb.mxu0 %v2113_v9 }
0x12d2   :  { %1785 = vrcp.f32 %v608_v22  ;;  %v635_v36 = vand.u32 2147483648, %v608_v22  ;;  %v633_v40 = vand.u32 2147483647, %v608_v22  ;;  %vm629_vm15 = vweird.f32 %v608_v22  ;;  %990 = vmatpush.msrb.mxu3 %v2113_v9 }
0x12d3   :  { %925 = vmatpush.msrb.mxu0 %v2115_v11 }
0x12d4   :  { %v636_v44 = vor.u32 1.1754944e-38, %v635_v36  ;;  %vm634_vm3 = vcmp.eq.f32.partialorder %v633_v40, 8.507059e+37  ;;  %991 = vmatpush.msrb.mxu3 %v2115_v11 }
0x12d5   :  { %926 = vmatpush.msrb.mxu0 %v2118_v13 }
0x12d6   :  { %992 = vmatpush.msrb.mxu3 %v2118_v13 }
0x12d7   :  { %927 = vmatpush.msrb.mxu0 %v2121_v16 }
0x12d8   :  { %v1786_v29 = vpop.eup %1785  ;;  %993 = vmatpush.msrb.mxu3 %v2121_v16 }
0x12d9   :  { %v625_v31 = vmul.f32 %v1786_v29, %v608_v22  ;;  %vm630_vm14 = vweird.f32 %v1786_v29 }
0x12da   :  { %vm631_vm0 = vmor %vm629_vm15, %vm630_vm14 }
0x12db   :  { %v626_v35 = vsub.f32 1.0, %v625_v31 }
0x12dd   :  { %v627_v39 = vmul.f32 %v1786_v29, %v626_v35 }
0x12df   :  { %v628_v42 = vadd.f32 %v1786_v29, %v627_v39 }
0x12e1   :  { %v632_v45 = vsel %vm631_vm0, %v1786_v29, %v628_v42 }
0x12e2   :  { %v637_v46 = vsel %vm634_vm3, %v636_v44, %v632_v45  ;;  %v1710_v45 = vld [vmem:[#allocation4 + $0x222] ss:$0 sm:$0xff] }
0x12e3   :  { %v638_v47 = vmul.f32 %v637_v46, %v2090_v24 }
0x12e5   :  { %1685 = vmatpush.xpose.msk.msra.mxu1 %vm43_vm5, %v638_v47  ;;  %1510 = vmatpush.msra.mxu2 %v638_v47  ;;  %v651_v14 = vsel %vm645_vm6, %v638_v47, 0.0  ;;  %v669_v50 = vsel %vm663_vm7, %v638_v47, 0.0 }
0x12e6   :  { %v653_v52 = vsel %vm43_vm5, %v651_v14, 0.0  ;;  %v671_v54 = vsel %vm43_vm5, %v669_v50, 0.0 }
0x12e7   :  { %1511 = vmatpush.msra.mxu2 %v623_v43  ;;  %v654_v55 = vadd.f32 %v653_v52, %v652_v51  ;;  %v672_v56 = vadd.f32 %v671_v54, %v670_v53 }
0x12e9   :  { %1686 = vmatpush.xpose.msk.msra.mxu1 %vm43_vm5, %v623_v43  ;;  %v655_v24 = vrot.slane %v654_v55, 4  ;;  %v673_v57 = vrot.slane %v672_v56, 4 }
0x12eb   :  { %v656_v58 = vadd.f32 %v655_v24, %v654_v55  ;;  %v674_v59 = vadd.f32 %v673_v57, %v672_v56 }
0x12ed   :  { %v657_v60 = vrot.slane %v656_v58, 2  ;;  %v675_v61 = vrot.slane %v674_v59, 2 }
0x12ef   :  { %v658_v62 = vadd.f32 %v657_v60, %v656_v58  ;;  %v676_v63 = vadd.f32 %v675_v61, %v674_v59 }
0x12f1   :  { %v659_v0 = vrot.slane %v658_v62, 1  ;;  %v677_v1 = vrot.slane %v676_v63, 1 }
0x12f3   :  { %v660_v2 = vadd.f32 %v659_v0, %v658_v62  ;;  %v678_v4 = vadd.f32 %v677_v1, %v676_v63 }
0x12f5   :  { %v661_v3 = vmul.f32 0.125, %v660_v2  ;;  %v679_v5 = vmul.f32 0.125, %v678_v4  ;;  %v1711_v2 = vld [vmem:[#allocation4 + $0x223] ss:$0 sm:$0xff] }
0x12f7   :  { %v681_v6 = vsel %vm680_vm8, %v661_v3, %v679_v5  ;;  %vm840_vm8 = vcmask 1024  }
0x12f8   :  { %v682_v7 = vmul.f32 %v681_v6, %v681_v6 }
0x12fa   :  { %v683_v8 = vsel %vm109_vm4, %v682_v7, 0.0 }
0x12fb   :  { %684 = vadd.xlane.f32.xlu1 %v683_v8 }
0x136e   :  { %v685_v18 = vpop.xlane.xlu1 %684 }
0x136f   :  { %1787 = vrsqrt.f32 %v685_v18  ;;  %vm693_vm9 = vcmp.eq.f32.partialorder %v685_v18, inf  ;;  %v696_v28 = vand.u32 2147483648, %v685_v18  ;;  %vm695_vm10 = vcmp.eq.f32.partialorder %v685_v18, 0.0 }
0x1375   :  { %v1788_v19 = vpop.eup %1787 }
0x1376   :  { %v687_v20 = vmul.f32 %v1788_v19, %v685_v18 }
0x1378   :  { %v688_v21 = vmul.f32 %v1788_v19, %v687_v20 }
0x137a   :  { %v689_v22 = vmul.f32 0.5, %v688_v21 }
0x137c   :  { %v690_v23 = vsub.f32 1.5, %v689_v22 }
0x137e   :  { %v691_v26 = vmul.f32 %v1788_v19, %v690_v23 }
0x1380   :  { %v692_v27 = vmul.f32 %v691_v26, %v685_v18 }
0x1382   :  { %v694_v29 = vsel %vm693_vm9, %v685_v18, %v692_v27 }
0x1383   :  { %v697_v30 = vsel %vm695_vm10, %v696_v28, %v694_v29 }
0x1384   :  { %v698_v31 = vmax.f32 %v697_v30, 1e-12 }
0x1386   :  { %1789 = vrcp.f32 %v698_v31  ;;  %v710_v35 = vand.u32 2147483648, %v698_v31  ;;  %v708_v37 = vand.u32 2147483647, %v698_v31  ;;  %vm704_vm12 = vweird.f32 %v698_v31 }
0x1388   :  { %v711_v40 = vor.u32 1.1754944e-38, %v710_v35  ;;  %vm709_vm14 = vcmp.eq.f32.partialorder %v708_v37, 8.507059e+37  ;;  %v909_v37 = vld [vmem:[%s2279_s1 + $0x2] sm:$0x3] }
0x138c   :  { %v1790_v32 = vpop.eup %1789 }
0x138d   :  { %v700_v33 = vmul.f32 %v1790_v32, %v698_v31  ;;  %vm705_vm11 = vweird.f32 %v1790_v32 }
0x138e   :  { %vm706_vm13 = vmor %vm704_vm12, %vm705_vm11 }
0x138f   :  { %v701_v34 = vsub.f32 1.0, %v700_v33 }
0x1391   :  { %v702_v36 = vmul.f32 %v1790_v32, %v701_v34 }
0x1393   :  { %v703_v39 = vadd.f32 %v1790_v32, %v702_v36 }
0x1395   :  { %v707_v42 = vsel %vm706_vm13, %v1790_v32, %v703_v39 }
0x1396   :  { %v712_v43 = vsel %vm709_vm14, %v711_v40, %v707_v42 }
0x1397   :  { %v713_v44 = vmul.f32 %v712_v43, %v681_v6 }
0x1399   :  { %884 = vrot.lane.b32.xlu0 %v713_v44, %s1935_s26  ;;  %1667 = vmatmul.msk.f32.vlgmr.msra.gmra.mxu0 %vm43_vm5, %v713_v44 }
0x139a   :  { %1669 = vmatmul.msk.f32.vlgmr.msra.gmra.mxu3 %vm43_vm5, %v713_v44  ;;  %1056 = vmatpush.msra.mxu0 %v2113_v9 }
0x139b   :  { %1122 = vmatpush.msra.mxu3 %v2113_v9 }
0x139c   :  { %1057 = vmatpush.msra.mxu0 %v2115_v11 }
0x139d   :  { %1123 = vmatpush.msra.mxu3 %v2115_v11 }
0x139e   :  { %1058 = vmatpush.msra.mxu0 %v2118_v13 }
0x139f   :  { %1124 = vmatpush.msra.mxu3 %v2118_v13 }
0x13a0   :  { %1059 = vmatpush.msra.mxu0 %v2121_v16 }
0x13a1   :  { %1125 = vmatpush.msra.mxu3 %v2121_v16 }
0x140b   :  { %v885_v6 = vpop.permute.xlu0 %884 }
0x1416   :  { %v774_v46 = vpop.f32.mrf.mxu0 }
0x1417   :  { %v775_v47 = vadd.f32 %v1710_v45, %v774_v46 }
0x1419   :  { %v777_v48 = vmax.f32 %v775_v47, 0.0 }
0x141b   :  { %795 = vmatmul.f32.vlgmr.msrb.gmra.mxu1 %v777_v48 }
0x141d   :  { %v860_v14 = vpop.f32.mrf.mxu3 }
0x141e   :  { %v863_v50 = vadd.f32 %v860_v14, %v842_v49 }
0x1420   :  { %1791 = vtanh.f32 %v863_v50  ;;  %v1670_v52 = vmul.f32 -1.442695, %v863_v50 }
0x1422   :  { %1793 = vpow2.f32 %v1670_v52 }
0x1426   :  { %v1792_v51 = vpop.eup %1791 }
0x1427   :  { %889 = vrot.lane.b32.xlu2 %v1792_v51, %s1935_s26 }
0x1428   :  { %v1794_v53 = vpop.eup %1793 }
0x1429   :  { %v867_v54 = vadd.f32 1.0, %v1794_v53 }
0x142b   :  { %1795 = vrcp.f32 %v867_v54  ;;  %v879_v59 = vand.u32 2147483648, %v867_v54  ;;  %vm873_vm0 = vweird.f32 %v867_v54  ;;  %v877_v60 = vand.u32 2147483647, %v867_v54 }
0x142d   :  { %v880_v62 = vor.u32 1.1754944e-38, %v879_v59  ;;  %vm878_vm2 = vcmp.eq.f32.partialorder %v877_v60, 8.507059e+37 }
0x1431   :  { %v1796_v55 = vpop.eup %1795 }
0x1432   :  { %v869_v56 = vmul.f32 %v1796_v55, %v867_v54  ;;  %vm874_vm15 = vweird.f32 %v1796_v55 }
0x1433   :  { %vm875_vm1 = vmor %vm873_vm0, %vm874_vm15 }
0x1434   :  { %v870_v24 = vsub.f32 1.0, %v869_v56 }
0x1436   :  { %v871_v57 = vmul.f32 %v1796_v55, %v870_v24 }
0x1438   :  { %v872_v58 = vadd.f32 %v1796_v55, %v871_v57 }
0x143a   :  { %v876_v61 = vsel %vm875_vm1, %v1796_v55, %v872_v58 }
0x143b   :  { %v881_v0 = vsel %vm878_vm2, %v880_v62, %v876_v61 }
0x143c   :  { %v887_v7 = vmul.f32 %v885_v6, %v881_v0 }
0x1481   :  { %v890_v63 = vpop.permute.xlu2 %889 }
0x1482   :  { %v892_v1 = vmul.f32 %v890_v63, %v881_v0  ;;  %v975_v63 = vld [vmem:[%s2279_s1 + $0x4] sm:$0x3] }
0x1484   :  { %894 = vrot.lane.b32.xlu1 %v892_v1, %s1935_s26 }
0x1498   :  { %v796_v4 = vpop.f32.mrf.mxu1 }
0x1499   :  { %v797_v3 = vadd.f32 %v1711_v2, %v796_v4 }
0x149b   :  { %v799_v5 = vmax.f32 %v797_v3, 0.0 }
0x149d   :  { %817 = vmatmul.f32.vlgmr.msrb.gmra.mxu2 %v799_v5 }
0x14f6   :  { %v895_v8 = vpop.permute.xlu1 %894 }
0x14f7   :  { %v2149_v10 = vadd.f32 %v895_v8, %v887_v7 }
0x14f9   :  { %1797 = vtanh.f32 %v2149_v10 }
0x14ff   :  { %v1798_v12 = vpop.eup %1797 }
0x1500   :  { %900 = vrot.lane.b32.xlu2 %v1798_v12, %s1935_s26 }
0x1520   :  { %v818_v17 = vpop.f32.mrf.mxu2 }
0x1521   :  { %v819_v18 = vadd.f32 %v1712_v15, %v818_v17 }
0x1523   :  { %v1668_v19 = vmul.f32 -1.442695, %v819_v18 }
0x1525   :  { %1799 = vpow2.f32 %v1668_v19 }
0x152b   :  { %v1800_v20 = vpop.eup %1799 }
0x152c   :  { %v824_v21 = vadd.f32 1.0, %v1800_v20 }
0x152e   :  { %1801 = vrcp.f32 %v824_v21  ;;  %v836_v27 = vand.u32 2147483648, %v824_v21  ;;  %v834_v29 = vand.u32 2147483647, %v824_v21  ;;  %vm830_vm6 = vweird.f32 %v824_v21 }
0x1530   :  { %v837_v31 = vor.u32 1.1754944e-38, %v836_v27  ;;  %vm835_vm9 = vcmp.eq.f32.partialorder %v834_v29, 8.507059e+37 }
0x1534   :  { %v1802_v22 = vpop.eup %1801 }
0x1535   :  { %v826_v23 = vmul.f32 %v1802_v22, %v824_v21  ;;  %vm831_vm3 = vweird.f32 %v1802_v22 }
0x1536   :  { %vm832_vm7 = vmor %vm830_vm6, %vm831_vm3 }
0x1537   :  { %v827_v26 = vsub.f32 1.0, %v826_v23 }
0x1539   :  { %v828_v28 = vmul.f32 %v1802_v22, %v827_v26 }
0x153b   :  { %v829_v30 = vadd.f32 %v1802_v22, %v828_v28 }
0x153d   :  { %v833_v32 = vsel %vm832_vm7, %v1802_v22, %v829_v30 }
0x153e   :  { %v838_v33 = vsel %vm835_vm9, %v837_v31, %v833_v32  ;;  %v1041_v32 = vld [vmem:[%s2279_s1 + $0x6] sm:$0x3] }
0x153f   :  { %841 = vst.msk [vmem:[%s2281_s3] sm:$0x3] %vm840_vm8, %v838_v33 }
0x155a   :  { %v901_v34 = vpop.permute.xlu2 %900 }
0x155b   :  { %v903_v35 = vmul.f32 %v901_v34, %v881_v0 }
0x155d   :  { %905 = vrot.lane.b32.xlu0 %v903_v35, %s1936_s27 }
0x15cf   :  { %v906_v36 = vpop.permute.xlu0 %905 }
0x15d0   :  { %908 = vst.msk [vmem:[#allocation3] sm:$0x3] %vm109_vm4, %v906_v36  ;;  %1671 = vmatmul.msk.f32.vlgmr.msrb.gmra.mxu0 %vm43_vm5, %v906_v36 }
0x15d1   :  { %1188 = vmatpush.msrb.mxu0 %v2113_v9 }
0x15d3   :  { %1189 = vmatpush.msrb.mxu0 %v2115_v11 }
0x15d5   :  { %1190 = vmatpush.msrb.mxu0 %v2118_v13 }
0x15d7   :  { %1191 = vmatpush.msrb.mxu0 %v2121_v16 }
0x164d   :  { %v929_v39 = vpop.f32.mrf.mxu0 }
0x164e   :  { %v932_v40 = vadd.f32 %v929_v39, %v909_v37 }
0x1650   :  { %1803 = vtanh.f32 %v932_v40  ;;  %v1672_v43 = vmul.f32 -1.442695, %v932_v40 }
0x1652   :  { %1805 = vpow2.f32 %v1672_v43 }
0x1656   :  { %v1804_v42 = vpop.eup %1803 }
0x1657   :  { %955 = vrot.lane.b32.xlu2 %v1804_v42, %s1935_s26 }
0x1658   :  { %v1806_v44 = vpop.eup %1805 }
0x1659   :  { %v936_v45 = vadd.f32 1.0, %v1806_v44 }
0x165b   :  { %1807 = vrcp.f32 %v936_v45  ;;  %v948_v50 = vand.u32 2147483648, %v936_v45  ;;  %vm942_vm11 = vweird.f32 %v936_v45  ;;  %v946_v51 = vand.u32 2147483647, %v936_v45 }
0x165d   :  { %v949_v53 = vor.u32 1.1754944e-38, %v948_v50  ;;  %vm947_vm13 = vcmp.eq.f32.partialorder %v946_v51, 8.507059e+37 }
0x1661   :  { %v1808_v46 = vpop.eup %1807 }
0x1662   :  { %v938_v47 = vmul.f32 %v1808_v46, %v936_v45  ;;  %vm943_vm10 = vweird.f32 %v1808_v46 }
0x1663   :  { %vm944_vm12 = vmor %vm942_vm11, %vm943_vm10 }
0x1664   :  { %v939_v48 = vsub.f32 1.0, %v938_v47 }
0x1666   :  { %v940_v49 = vmul.f32 %v1808_v46, %v939_v48 }
0x1668   :  { %v941_v14 = vadd.f32 %v1808_v46, %v940_v49 }
0x166a   :  { %v945_v52 = vsel %vm944_vm12, %v1808_v46, %v941_v14 }
0x166b   :  { %v950_v55 = vsel %vm947_vm13, %v949_v53, %v945_v52 }
0x166c   :  { %v953_v24 = vmul.f32 %v950_v55, %v2149_v10 }
0x16b1   :  { %v956_v54 = vpop.permute.xlu2 %955 }
0x16b2   :  { %v958_v56 = vmul.f32 %v956_v54, %v950_v55 }
0x16b4   :  { %960 = vrot.lane.b32.xlu1 %v958_v56, %s1935_s26  ;;  %v1107_v56 = vld [vmem:[%s2279_s1 + $0x8] sm:$0x3] }
0x1726   :  { %v961_v57 = vpop.permute.xlu1 %960 }
0x1727   :  { %v963_v58 = vadd.f32 %v961_v57, %v953_v24 }
0x1729   :  { %1809 = vtanh.f32 %v963_v58 }
0x172f   :  { %v1810_v59 = vpop.eup %1809 }
0x1730   :  { %966 = vrot.lane.b32.xlu0 %v1810_v59, %s1935_s26 }
0x17a2   :  { %v967_v60 = vpop.permute.xlu0 %966 }
0x17a3   :  { %v969_v61 = vmul.f32 %v967_v60, %v950_v55 }
0x17a5   :  { %971 = vrot.lane.b32.xlu2 %v969_v61, %s1936_s27 }
0x17ff   :  { %v972_v62 = vpop.permute.xlu2 %971 }
0x1800   :  { %974 = vst.msk [vmem:[#allocation3 + $0x2] sm:$0x3] %vm109_vm4, %v972_v62  ;;  %1673 = vmatmul.msk.f32.vlgmr.msrb.gmra.mxu3 %vm43_vm5, %v972_v62 }
0x1801   :  { %1254 = vmatpush.msrb.mxu3 %v2113_v9 }
0x1803   :  { %1255 = vmatpush.msrb.mxu3 %v2115_v11 }
0x1805   :  { %1256 = vmatpush.msrb.mxu3 %v2118_v13 }
0x1807   :  { %1257 = vmatpush.msrb.mxu3 %v2121_v16 }
0x1883   :  { %v995_v0 = vpop.f32.mrf.mxu3 }
0x1884   :  { %v998_v1 = vadd.f32 %v995_v0, %v975_v63 }
0x1886   :  { %1811 = vtanh.f32 %v998_v1  ;;  %v1674_v4 = vmul.f32 -1.442695, %v998_v1 }
0x1888   :  { %1813 = vpow2.f32 %v1674_v4 }
0x188c   :  { %v1812_v2 = vpop.eup %1811 }
0x188d   :  { %1021 = vrot.lane.b32.xlu1 %v1812_v2, %s1935_s26 }
0x188e   :  { %v1814_v3 = vpop.eup %1813 }
0x188f   :  { %v1002_v5 = vadd.f32 1.0, %v1814_v3 }
0x1891   :  { %1815 = vrcp.f32 %v1002_v5  ;;  %v1014_v15 = vand.u32 2147483648, %v1002_v5  ;;  %vm1008_vm15 = vweird.f32 %v1002_v5  ;;  %v1012_v17 = vand.u32 2147483647, %v1002_v5 }
0x1893   :  { %v1015_v19 = vor.u32 1.1754944e-38, %v1014_v15  ;;  %vm1013_vm1 = vcmp.eq.f32.partialorder %v1012_v17, 8.507059e+37 }
0x1897   :  { %v1816_v6 = vpop.eup %1815 }
0x1898   :  { %v1004_v7 = vmul.f32 %v1816_v6, %v1002_v5  ;;  %vm1009_vm14 = vweird.f32 %v1816_v6 }
0x1899   :  { %vm1010_vm0 = vmor %vm1008_vm15, %vm1009_vm14 }
0x189a   :  { %v1005_v8 = vsub.f32 1.0, %v1004_v7 }
0x189c   :  { %v1006_v10 = vmul.f32 %v1816_v6, %v1005_v8 }
0x189e   :  { %v1007_v12 = vadd.f32 %v1816_v6, %v1006_v10 }
0x18a0   :  { %v1011_v18 = vsel %vm1010_vm0, %v1816_v6, %v1007_v12 }
0x18a1   :  { %v1016_v21 = vsel %vm1013_vm1, %v1015_v19, %v1011_v18 }
0x18a2   :  { %v1019_v23 = vmul.f32 %v1016_v21, %v963_v58 }
0x18ff   :  { %v1022_v20 = vpop.permute.xlu1 %1021 }
0x1900   :  { %v1024_v22 = vmul.f32 %v1022_v20, %v1016_v21 }
0x1902   :  { %1026 = vrot.lane.b32.xlu0 %v1024_v22, %s1935_s26  ;;  %v1173_v22 = vld [vmem:[%s2279_s1 + $0xa] sm:$0x3] }
0x1974   :  { %v1027_v26 = vpop.permute.xlu0 %1026 }
0x1975   :  { %v1029_v27 = vadd.f32 %v1027_v26, %v1019_v23 }
0x1977   :  { %1817 = vtanh.f32 %v1029_v27 }
0x197d   :  { %v1818_v28 = vpop.eup %1817 }
0x197e   :  { %1032 = vrot.lane.b32.xlu2 %v1818_v28, %s1935_s26 }
0x19d8   :  { %v1033_v29 = vpop.permute.xlu2 %1032 }
0x19d9   :  { %v1035_v30 = vmul.f32 %v1033_v29, %v1016_v21 }
0x19db   :  { %1037 = vrot.lane.b32.xlu1 %v1035_v30, %s1936_s27 }
0x1a4d   :  { %v1038_v31 = vpop.permute.xlu1 %1037 }
0x1a4e   :  { %1040 = vst.msk [vmem:[#allocation3 + $0x4] sm:$0x3] %vm109_vm4, %v1038_v31  ;;  %1675 = vmatmul.msk.f32.vlgmr.msra.gmra.mxu0 %vm43_vm5, %v1038_v31 }
0x1a4f   :  { %1320 = vmatpush.msra.mxu0 %v2113_v9 }
0x1a51   :  { %1321 = vmatpush.msra.mxu0 %v2115_v11 }
0x1a53   :  { %1322 = vmatpush.msra.mxu0 %v2118_v13 }
0x1a55   :  { %1323 = vmatpush.msra.mxu0 %v2121_v16 }
0x1acb   :  { %v1061_v33 = vpop.f32.mrf.mxu0 }
0x1acc   :  { %v1064_v34 = vadd.f32 %v1061_v33, %v1041_v32 }
0x1ace   :  { %1819 = vtanh.f32 %v1064_v34  ;;  %v1676_v36 = vmul.f32 -1.442695, %v1064_v34 }
0x1ad0   :  { %1821 = vpow2.f32 %v1676_v36 }
0x1ad4   :  { %v1820_v35 = vpop.eup %1819 }
0x1ad5   :  { %1087 = vrot.lane.b32.xlu0 %v1820_v35, %s1935_s26 }
0x1ad6   :  { %v1822_v37 = vpop.eup %1821 }
0x1ad7   :  { %v1068_v9 = vadd.f32 1.0, %v1822_v37 }
0x1ad9   :  { %1823 = vrcp.f32 %v1068_v9  ;;  %v1080_v42 = vand.u32 2147483648, %v1068_v9  ;;  %vm1074_vm3 = vweird.f32 %v1068_v9  ;;  %v1078_v43 = vand.u32 2147483647, %v1068_v9 }
0x1adb   :  { %v1081_v45 = vor.u32 1.1754944e-38, %v1080_v42  ;;  %vm1079_vm7 = vcmp.eq.f32.partialorder %v1078_v43, 8.507059e+37 }
0x1adf   :  { %v1824_v11 = vpop.eup %1823 }
0x1ae0   :  { %v1070_v39 = vmul.f32 %v1824_v11, %v1068_v9  ;;  %vm1075_vm2 = vweird.f32 %v1824_v11 }
0x1ae1   :  { %vm1076_vm6 = vmor %vm1074_vm3, %vm1075_vm2 }
0x1ae2   :  { %v1071_v13 = vsub.f32 1.0, %v1070_v39 }
0x1ae4   :  { %v1072_v40 = vmul.f32 %v1824_v11, %v1071_v13 }
0x1ae6   :  { %v1073_v16 = vadd.f32 %v1824_v11, %v1072_v40 }
0x1ae8   :  { %v1077_v44 = vsel %vm1076_vm6, %v1824_v11, %v1073_v16 }
0x1ae9   :  { %v1082_v47 = vsel %vm1079_vm7, %v1081_v45, %v1077_v44 }
0x1aea   :  { %v1085_v49 = vmul.f32 %v1082_v47, %v1029_v27 }
0x1b47   :  { %v1088_v46 = vpop.permute.xlu0 %1087 }
0x1b48   :  { %v1090_v48 = vmul.f32 %v1088_v46, %v1082_v47 }
0x1b4a   :  { %1092 = vrot.lane.b32.xlu2 %v1090_v48, %s1935_s26  ;;  %v1239_v48 = vld [vmem:[%s2279_s1 + $0xc] sm:$0x3] }
0x1ba4   :  { %v1093_v14 = vpop.permute.xlu2 %1092 }
0x1ba5   :  { %v1095_v50 = vadd.f32 %v1093_v14, %v1085_v49 }
0x1ba7   :  { %1825 = vtanh.f32 %v1095_v50 }
0x1bad   :  { %v1826_v51 = vpop.eup %1825 }
0x1bae   :  { %1098 = vrot.lane.b32.xlu1 %v1826_v51, %s1935_s26 }
0x1c20   :  { %v1099_v52 = vpop.permute.xlu1 %1098 }
0x1c21   :  { %v1101_v53 = vmul.f32 %v1099_v52, %v1082_v47 }
0x1c23   :  { %1103 = vrot.lane.b32.xlu0 %v1101_v53, %s1936_s27 }
0x1c95   :  { %v1104_v54 = vpop.permute.xlu0 %1103 }
0x1c96   :  { %1106 = vst.msk [vmem:[#allocation3 + $0x6] sm:$0x3] %vm109_vm4, %v1104_v54  ;;  %1677 = vmatmul.msk.f32.vlgmr.msra.gmra.mxu3 %vm43_vm5, %v1104_v54 }
0x1c9d   :  { %v2199_v55 = vld [vmem:[#allocation3] sm:$0xff] }
0x1c9e   :  { %1687 = vmatmul.msk.f32.vlgmr.msra.gmra.mxu1 %vm43_vm5, %v2199_v55 }
0x1d19   :  { %v1127_v24 = vpop.f32.mrf.mxu3 }
0x1d1a   :  { %v1130_v57 = vadd.f32 %v1127_v24, %v1107_v56 }
0x1d1c   :  { %1827 = vtanh.f32 %v1130_v57  ;;  %v1678_v59 = vmul.f32 -1.442695, %v1130_v57 }
0x1d1e   :  { %1829 = vpow2.f32 %v1678_v59 }
0x1d22   :  { %v1828_v58 = vpop.eup %1827 }
0x1d23   :  { %1153 = vrot.lane.b32.xlu2 %v1828_v58, %s1935_s26 }
0x1d24   :  { %v1830_v60 = vpop.eup %1829 }
0x1d25   :  { %v1134_v61 = vadd.f32 1.0, %v1830_v60 }
0x1d27   :  { %1831 = vrcp.f32 %v1134_v61  ;;  %v1146_v4 = vand.u32 2147483648, %v1134_v61  ;;  %vm1140_vm9 = vweird.f32 %v1134_v61  ;;  %v1144_v3 = vand.u32 2147483647, %v1134_v61 }
0x1d29   :  { %v1147_v6 = vor.u32 1.1754944e-38, %v1146_v4  ;;  %vm1145_vm11 = vcmp.eq.f32.partialorder %v1144_v3, 8.507059e+37 }
0x1d2d   :  { %v1832_v62 = vpop.eup %1831 }
0x1d2e   :  { %v1136_v63 = vmul.f32 %v1832_v62, %v1134_v61  ;;  %vm1141_vm8 = vweird.f32 %v1832_v62 }
0x1d2f   :  { %vm1142_vm10 = vmor %vm1140_vm9, %vm1141_vm8 }
0x1d30   :  { %v1137_v0 = vsub.f32 1.0, %v1136_v63 }
0x1d32   :  { %v1138_v1 = vmul.f32 %v1832_v62, %v1137_v0 }
0x1d34   :  { %v1139_v2 = vadd.f32 %v1832_v62, %v1138_v1 }
0x1d36   :  { %v1143_v5 = vsel %vm1142_vm10, %v1832_v62, %v1139_v2 }
0x1d37   :  { %v1148_v8 = vsel %vm1145_vm11, %v1147_v6, %v1143_v5  ;;  %vm1441_vm11 = vcmask 130048  }
0x1d38   :  { %v1151_v12 = vmul.f32 %v1148_v8, %v1095_v50 }
0x1d7d   :  { %v1154_v7 = vpop.permute.xlu2 %1153 }
0x1d7e   :  { %v1156_v10 = vmul.f32 %v1154_v7, %v1148_v8 }
0x1d80   :  { %1158 = vrot.lane.b32.xlu1 %v1156_v10, %s1935_s26  ;;  %v1305_v10 = vld [vmem:[%s2279_s1 + $0xe] sm:$0x3] }
0x1df2   :  { %v1159_v15 = vpop.permute.xlu1 %1158 }
0x1df3   :  { %v1161_v17 = vadd.f32 %v1159_v15, %v1151_v12 }
0x1df5   :  { %1833 = vtanh.f32 %v1161_v17 }
0x1dfb   :  { %v1834_v18 = vpop.eup %1833 }
0x1dfc   :  { %1164 = vrot.lane.b32.xlu0 %v1834_v18, %s1935_s26 }
0x1e6e   :  { %v1165_v19 = vpop.permute.xlu0 %1164 }
0x1e6f   :  { %v1167_v20 = vmul.f32 %v1165_v19, %v1148_v8 }
0x1e71   :  { %1169 = vrot.lane.b32.xlu2 %v1167_v20, %s1936_s27 }
0x1ecb   :  { %v1170_v21 = vpop.permute.xlu2 %1169 }
0x1ecc   :  { %1172 = vst.msk [vmem:[#allocation3 + $0x8] sm:$0x3] %vm109_vm4, %v1170_v21  ;;  %1679 = vmatmul.msk.f32.vlgmr.msrb.gmra.mxu0 %vm43_vm5, %v1170_v21 }
0x1f49   :  { %v1193_v23 = vpop.f32.mrf.mxu0 }
0x1f4a   :  { %v1196_v26 = vadd.f32 %v1193_v23, %v1173_v22 }
0x1f4c   :  { %1835 = vtanh.f32 %v1196_v26  ;;  %v1680_v28 = vmul.f32 -1.442695, %v1196_v26 }
0x1f4e   :  { %1837 = vpow2.f32 %v1680_v28 }
0x1f52   :  { %v1836_v27 = vpop.eup %1835 }
0x1f53   :  { %1219 = vrot.lane.b32.xlu1 %v1836_v27, %s1935_s26 }
0x1f54   :  { %v1838_v29 = vpop.eup %1837 }
0x1f55   :  { %v1200_v30 = vadd.f32 1.0, %v1838_v29 }
0x1f57   :  { %1839 = vrcp.f32 %v1200_v30  ;;  %v1212_v36 = vand.u32 2147483648, %v1200_v30  ;;  %vm1206_vm13 = vweird.f32 %v1200_v30  ;;  %v1210_v37 = vand.u32 2147483647, %v1200_v30 }
0x1f59   :  { %v1213_v11 = vor.u32 1.1754944e-38, %v1212_v36  ;;  %vm1211_vm15 = vcmp.eq.f32.partialorder %v1210_v37, 8.507059e+37  ;;  %v1428_v37 = vpop.f32.mrf.mxu1 }
0x1f5d   :  { %v1840_v31 = vpop.eup %1839 }
0x1f5e   :  { %v1202_v32 = vmul.f32 %v1840_v31, %v1200_v30  ;;  %vm1207_vm12 = vweird.f32 %v1840_v31 }
0x1f5f   :  { %vm1208_vm14 = vmor %vm1206_vm13, %vm1207_vm12 }
0x1f60   :  { %v1203_v33 = vsub.f32 1.0, %v1202_v32 }
0x1f62   :  { %v1204_v34 = vmul.f32 %v1840_v31, %v1203_v33 }
0x1f64   :  { %v1205_v35 = vadd.f32 %v1840_v31, %v1204_v34 }
0x1f66   :  { %v1209_v9 = vsel %vm1208_vm14, %v1840_v31, %v1205_v35  ;;  %v2236_v35 = vand.u32 127, %v639_v25 }
0x1f67   :  { %v1214_v13 = vsel %vm1211_vm15, %v1213_v11, %v1209_v9 }
0x1f68   :  { %v1217_v16 = vmul.f32 %v1214_v13, %v1161_v17  ;;  %v1436_v36 = vand.u32 1, %v2236_v35 }
0x1f6a   :  { %vm1437_vm10 = vcmp.eq.s32.totalorder %v2096_v38, %v1436_v36  ;;  %vm1438_vm15 = vcmp.eq.s32.totalorder %v2098_v41, %v1436_v36  ;;  %v1374_v41 = vld [vmem:[#allocation4 + $0x48] sm:$0xff]  ;;  %v1381_v36 = vld [vmem:[#allocation4 + $0x80] sm:$0xff] }
0x1f6b   :  { %v1439_v9 = vsel %vm1437_vm10, %v1428_v37, -inf }
0x1f6c   :  { %v1442_v11 = vsel %vm1441_vm11, %v1439_v9, -inf }
0x1fc5   :  { %v1220_v39 = vpop.permute.xlu1 %1219 }
0x1fc6   :  { %v1222_v40 = vmul.f32 %v1220_v39, %v1214_v13 }
0x1fc8   :  { %1224 = vrot.lane.b32.xlu0 %v1222_v40, %s1935_s26 }
0x203a   :  { %v1225_v42 = vpop.permute.xlu0 %1224 }
0x203b   :  { %v1227_v43 = vadd.f32 %v1225_v42, %v1217_v16 }
0x203d   :  { %1841 = vtanh.f32 %v1227_v43 }
0x2043   :  { %v1842_v44 = vpop.eup %1841 }
0x2044   :  { %1230 = vrot.lane.b32.xlu2 %v1842_v44, %s1935_s26 }
0x209e   :  { %v1231_v45 = vpop.permute.xlu2 %1230 }
0x209f   :  { %v1233_v46 = vmul.f32 %v1231_v45, %v1214_v13 }
0x20a1   :  { %1235 = vrot.lane.b32.xlu1 %v1233_v46, %s1936_s27 }
0x2113   :  { %v1236_v47 = vpop.permute.xlu1 %1235 }
0x2114   :  { %1238 = vst.msk [vmem:[#allocation3 + $0xa] sm:$0x3] %vm109_vm4, %v1236_v47  ;;  %1681 = vmatmul.msk.f32.vlgmr.msrb.gmra.mxu3 %vm43_vm5, %v1236_v47 }
0x2197   :  { %v1259_v49 = vpop.f32.mrf.mxu3 }
0x2198   :  { %v1262_v14 = vadd.f32 %v1259_v49, %v1239_v48 }
0x219a   :  { %1843 = vtanh.f32 %v1262_v14  ;;  %v1682_v51 = vmul.f32 -1.442695, %v1262_v14 }
0x219c   :  { %1845 = vpow2.f32 %v1682_v51 }
0x21a0   :  { %v1844_v50 = vpop.eup %1843 }
0x21a1   :  { %1285 = vrot.lane.b32.xlu0 %v1844_v50, %s1935_s26 }
0x21a2   :  { %v1846_v52 = vpop.eup %1845 }
0x21a3   :  { %v1266_v53 = vadd.f32 1.0, %v1846_v52 }
0x21a5   :  { %1847 = vrcp.f32 %v1266_v53  ;;  %v1278_v59 = vand.u32 2147483648, %v1266_v53  ;;  %vm1272_vm1 = vweird.f32 %v1266_v53  ;;  %v1276_v60 = vand.u32 2147483647, %v1266_v53 }
0x21a7   :  { %v1279_v62 = vor.u32 1.1754944e-38, %v1278_v59  ;;  %vm1277_vm3 = vcmp.eq.f32.partialorder %v1276_v60, 8.507059e+37 }
0x21ab   :  { %v1848_v54 = vpop.eup %1847 }
0x21ac   :  { %v1268_v56 = vmul.f32 %v1848_v54, %v1266_v53  ;;  %vm1273_vm0 = vweird.f32 %v1848_v54 }
0x21ad   :  { %vm1274_vm2 = vmor %vm1272_vm1, %vm1273_vm0  ;;  %vm1528_vm0 = vcmask 523264  }
0x21ae   :  { %v1269_v24 = vsub.f32 1.0, %v1268_v56 }
0x21b0   :  { %v1270_v57 = vmul.f32 %v1848_v54, %v1269_v24 }
0x21b2   :  { %v1271_v58 = vadd.f32 %v1848_v54, %v1270_v57 }
0x21b4   :  { %v1275_v61 = vsel %vm1274_vm2, %v1848_v54, %v1271_v58 }
0x21b5   :  { %v1280_v0 = vsel %vm1277_vm3, %v1279_v62, %v1275_v61 }
0x21b6   :  { %v1283_v2 = vmul.f32 %v1280_v0, %v1227_v43 }
0x2213   :  { %v1286_v63 = vpop.permute.xlu0 %1285 }
0x2214   :  { %v1288_v1 = vmul.f32 %v1286_v63, %v1280_v0  ;;  %v1380_v63 = vld [vmem:[#allocation4 + $0x78] sm:$0xff] }
0x2215   :  { %1543 = vmatpush.msra.mxu3 %v1380_v63 }
0x2216   :  { %1290 = vrot.lane.b32.xlu2 %v1288_v1, %s1935_s26  ;;  %v1378_v1 = vld [vmem:[#allocation4 + $0x68] sm:$0xff] }
0x2270   :  { %v1291_v4 = vpop.permute.xlu2 %1290 }
0x2271   :  { %v1293_v3 = vadd.f32 %v1291_v4, %v1283_v2  ;;  %v1377_v2 = vld [vmem:[#allocation4 + $0x60] sm:$0xff]  ;;  %v1376_v4 = vld [vmem:[#allocation4 + $0x58] sm:$0xff] }
0x2273   :  { %1849 = vtanh.f32 %v1293_v3 }
0x2279   :  { %v1850_v5 = vpop.eup %1849 }
0x227a   :  { %1296 = vrot.lane.b32.xlu1 %v1850_v5, %s1935_s26  ;;  %v1373_v5 = vld [vmem:[#allocation4 + $0x40] sm:$0xff] }
0x22ec   :  { %v1297_v6 = vpop.permute.xlu1 %1296 }
0x22ed   :  { %v1299_v7 = vmul.f32 %v1297_v6, %v1280_v0  ;;  %v1379_v0 = vld [vmem:[#allocation4 + $0x70] sm:$0xff] }
0x22ee   :  { %1544 = vmatpush.msra.mxu3 %v1379_v0 }
0x22ef   :  { %1301 = vrot.lane.b32.xlu0 %v1299_v7, %s1936_s27 }
0x22f0   :  { %1545 = vmatpush.msra.mxu3 %v1378_v1 }
0x22f2   :  { %1546 = vmatpush.msra.mxu3 %v1377_v2 }
0x22f4   :  { %1547 = vmatpush.msra.mxu3 %v1376_v4 }
0x2361   :  { %v1302_v8 = vpop.permute.xlu0 %1301 }
0x2362   :  { %1304 = vst.msk [vmem:[#allocation3 + $0xc] sm:$0x3] %vm109_vm4, %v1302_v8  ;;  %1683 = vmatmul.msk.f32.vlgmr.msra.gmra.mxu0 %vm43_vm5, %v1302_v8 }
0x23df   :  { %v1325_v12 = vpop.f32.mrf.mxu0 }
0x23e0   :  { %v1328_v15 = vadd.f32 %v1325_v12, %v1305_v10 }
0x23e2   :  { %1851 = vtanh.f32 %v1328_v15  ;;  %v1684_v18 = vmul.f32 -1.442695, %v1328_v15 }
0x23e4   :  { %1853 = vpow2.f32 %v1684_v18  ;;  %v1396_v18 = vld [vmem:[#allocation4 + $0xf8] sm:$0xff] }
0x23e5   :  { %1561 = vmatpush.msrb.mxu0 %v1396_v18 }
0x23e8   :  { %v1852_v17 = vpop.eup %1851 }
0x23e9   :  { %1351 = vrot.lane.b32.xlu2 %v1852_v17, %s1935_s26 }
0x23ea   :  { %v1854_v19 = vpop.eup %1853 }
0x23eb   :  { %v1332_v20 = vadd.f32 1.0, %v1854_v19  ;;  %v1395_v19 = vld [vmem:[#allocation4 + $0xf0] sm:$0xff] }
0x23ec   :  { %1562 = vmatpush.msrb.mxu0 %v1395_v19 }
0x23ed   :  { %1855 = vrcp.f32 %v1332_v20  ;;  %v1344_v28 = vand.u32 2147483648, %v1332_v20  ;;  %vm1338_vm7 = vweird.f32 %v1332_v20  ;;  %v1342_v29 = vand.u32 2147483647, %v1332_v20 }
0x23ef   :  { %v1345_v31 = vor.u32 1.1754944e-38, %v1344_v28  ;;  %vm1343_vm9 = vcmp.eq.f32.partialorder %v1342_v29, 8.507059e+37  ;;  %v1388_v28 = vld [vmem:[#allocation4 + $0xb8] sm:$0xff]  ;;  %v1387_v29 = vld [vmem:[#allocation4 + $0xb0] sm:$0xff] }
0x23f3   :  { %v1856_v21 = vpop.eup %1855 }
0x23f4   :  { %v1334_v22 = vmul.f32 %v1856_v21, %v1332_v20  ;;  %vm1339_vm6 = vweird.f32 %v1856_v21  ;;  %v1394_v20 = vld [vmem:[#allocation4 + $0xe8] sm:$0xff] }
0x23f5   :  { %vm1340_vm8 = vmor %vm1338_vm7, %vm1339_vm6  ;;  %1563 = vmatpush.msrb.mxu0 %v1394_v20  ;;  %vm1585_vm7 = vcmp.lt.s32.totalorder %v2236_v35, 12 }
0x23f6   :  { %v1335_v23 = vsub.f32 1.0, %v1334_v22  ;;  %v1392_v22 = vld [vmem:[#allocation4 + $0xd8] sm:$0xff] }
0x23f8   :  { %v1336_v26 = vmul.f32 %v1856_v21, %v1335_v23  ;;  %v1391_v23 = vld [vmem:[#allocation4 + $0xd0] sm:$0xff] }
0x23fa   :  { %v1337_v27 = vadd.f32 %v1856_v21, %v1336_v26  ;;  %v1390_v26 = vld [vmem:[#allocation4 + $0xc8] sm:$0xff] }
0x23fc   :  { %v1341_v30 = vsel %vm1340_vm8, %v1856_v21, %v1337_v27  ;;  %v1393_v21 = vld [vmem:[#allocation4 + $0xe0] sm:$0xff] }
0x23fd   :  { %v1346_v33 = vsel %vm1343_vm9, %v1345_v31, %v1341_v30  ;;  %1564 = vmatpush.msrb.mxu0 %v1393_v21  ;;  %v1389_v27 = vld [vmem:[#allocation4 + $0xc0] sm:$0xff]  ;;  %v1386_v30 = vld [vmem:[#allocation4 + $0xa8] sm:$0xff]  ;;  %vm1622_vm9 = vcmask 7168  }
0x23fe   :  { %v1349_v39 = vmul.f32 %v1346_v33, %v1293_v3  ;;  %v1375_v3 = vld [vmem:[#allocation4 + $0x50] sm:$0xff]  ;;  %v1385_v31 = vld [vmem:[#allocation4 + $0xa0] sm:$0xff] }
0x23ff   :  { %1548 = vmatpush.msra.mxu3 %v1375_v3  ;;  %1565 = vmatpush.msrb.mxu0 %v1392_v22 }
0x2401   :  { %1549 = vmatpush.msra.mxu3 %v1374_v41  ;;  %1566 = vmatpush.msrb.mxu0 %v1391_v23 }
0x2403   :  { %1550 = vmatpush.msra.mxu3 %v1373_v5  ;;  %1567 = vmatpush.msrb.mxu0 %v1390_v26 }
0x2405   :  { %1568 = vmatpush.msrb.mxu0 %v1389_v27 }
0x2407   :  { %1569 = vmatpush.msrb.mxu0 %v1388_v28 }
0x2409   :  { %1570 = vmatpush.msrb.mxu0 %v1387_v29 }
0x240b   :  { %1571 = vmatpush.msrb.mxu0 %v1386_v30 }
0x240d   :  { %1572 = vmatpush.msrb.mxu0 %v1385_v31 }
0x2443   :  { %v1352_v32 = vpop.permute.xlu2 %1351 }
0x2444   :  { %v1354_v34 = vmul.f32 %v1352_v32, %v1346_v33  ;;  %v1384_v32 = vld [vmem:[#allocation4 + $0x98] sm:$0xff] }
0x2445   :  { %1573 = vmatpush.msrb.mxu0 %v1384_v32 }
0x2446   :  { %1356 = vrot.lane.b32.xlu1 %v1354_v34, %s1935_s26  ;;  %v1382_v34 = vld [vmem:[#allocation4 + $0x88] sm:$0xff] }
0x2470   :  { %1443 = vmax.xlane.f32.xlu1 %v1442_v11 }
0x24b8   :  { %v1357_v13 = vpop.permute.xlu1 %1356 }
0x24b9   :  { %v1359_v40 = vadd.f32 %v1357_v13, %v1349_v39 }
0x24bb   :  { %1857 = vtanh.f32 %v1359_v40 }
0x24c1   :  { %v1858_v16 = vpop.eup %1857 }
0x24c2   :  { %1362 = vrot.lane.b32.xlu0 %v1858_v16, %s1935_s26 }
0x24e3   :  { %v1444_v43 = vpop.xlane.xlu1 %1443 }
0x24e4   :  { %v1448_v44 = vsub.f32 %v1439_v9, %v1444_v43 }
0x24e6   :  { %v1450_v45 = vmul.f32 1.442695, %v1448_v44 }
0x24e8   :  { %1859 = vpow2.f32 %v1450_v45 }
0x24ee   :  { %v1860_v38 = vpop.eup %1859 }
0x24ef   :  { %v1454_v46 = vsel %vm1441_vm11, %v1860_v38, 0.0 }
0x2534   :  { %v1363_v42 = vpop.permute.xlu0 %1362 }
0x2535   :  { %v1365_v25 = vmul.f32 %v1363_v42, %v1346_v33  ;;  %v1383_v33 = vld [vmem:[#allocation4 + $0x90] sm:$0xff] }
0x2536   :  { %1574 = vmatpush.msrb.mxu0 %v1383_v33 }
0x2537   :  { %1367 = vrot.lane.b32.xlu2 %v1365_v25, %s1936_s27  ;;  %s1937_s27 = smov [#allocation7]  }
0x2538   :  { %1575 = vmatpush.msrb.mxu0 %v1382_v34  ;;  %s1631_s11 = sshll.u32 %s1937_s27, 4  ;;  %s1632_s11 = int_to_ptr.vmem [resolvable:$true] %s1631_s11 }
0x253a   :  { %1576 = vmatpush.msrb.mxu0 %v1381_v36 }
0x2560   :  { %1455 = vadd.xlane.f32.xlu2 %v1454_v46 }
0x2591   :  { %v1368_v47 = vpop.permute.xlu2 %1367 }
0x2592   :  { %1370 = vst.msk [vmem:[#allocation3 + $0xe] sm:$0x3] %vm109_vm4, %v1368_v47 }
0x2599   :  { %v1372_v48 = vld [vmem:[#allocation3 + $0x8] sm:$0xff] }
0x259a   :  { %1688 = vmatmul.msk.f32.gmra.mxu1 %vm43_vm5, %v1372_v48  ;;  %1521 = vrot.lane.b32.xlu2 %v1372_v48, %s1935_s26 }
0x25d3   :  { %v1456_v49 = vpop.xlane.xlu2 %1455 }
0x25d4   :  { %1861 = vrcp.f32 %v1456_v49  ;;  %v1471_v52 = vand.u32 2147483648, %v1456_v49  ;;  %v1469_v54 = vand.u32 2147483647, %v1456_v49  ;;  %vm1465_vm13 = vweird.f32 %v1456_v49 }
0x25d6   :  { %v1472_v24 = vor.u32 1.1754944e-38, %v1471_v52  ;;  %vm1470_vm4 = vcmp.eq.f32.partialorder %v1469_v54, 8.507059e+37 }
0x25da   :  { %v1862_v14 = vpop.eup %1861 }
0x25db   :  { %v1461_v50 = vmul.f32 %v1862_v14, %v1456_v49  ;;  %vm1466_vm12 = vweird.f32 %v1862_v14 }
0x25dc   :  { %vm1467_vm14 = vmor %vm1465_vm13, %vm1466_vm12 }
0x25dd   :  { %v1462_v51 = vsub.f32 1.0, %v1461_v50 }
0x25df   :  { %v1463_v53 = vmul.f32 %v1862_v14, %v1462_v51  ;;  %v1714_v51 = vld [vmem:[#allocation4 + $0x221] ss:$0 sm:$0xff] }
0x25e1   :  { %v1464_v56 = vadd.f32 %v1862_v14, %v1463_v53 }
0x25e3   :  { %v1468_v57 = vsel %vm1467_vm14, %v1862_v14, %v1464_v56  ;;  %v1584_v56 = vcvt.s32.f32 %v2236_v35 }
0x25e4   :  { %v1473_v58 = vsel %vm1470_vm4, %v1472_v24, %v1468_v57 }
0x25e5   :  { %v1474_v59 = vmul.f32 %v1860_v38, %v1473_v58  ;;  %v1713_v38 = vld [vmem:[#allocation4 + $0x220] ss:$0 sm:$0xff] }
0x25e7   :  { %1689 = vmatmul.msk.f32.vlgmr.msra.gmra.mxu2 %vm1441_vm11, %v1474_v59 }
0x25f4   :  { %v1522_v49 = vpop.permute.xlu2 %1521 }
0x2617   :  { %v1431_v60 = vpop.f32.mrf.mxu1 }
0x2618   :  { %v1440_v61 = vsel %vm1438_vm15, %v1431_v60, -inf }
0x2619   :  { %v1445_v62 = vsel %vm1441_vm11, %v1440_v61, -inf }
0x261a   :  { %1446 = vmax.xlane.f32.xlu0 %v1445_v62 }
0x262e   :  { %1519 = vrot.lane.b32.xlu0 %v2199_v55, %s1935_s26 }
0x266a   :  { %v1513_v12 = vpop.f32.mrf.mxu2 }
0x268d   :  { %v1447_v6 = vpop.xlane.xlu0 %1446 }
0x268e   :  { %v1449_v7 = vsub.f32 %v1440_v61, %v1447_v6 }
0x2690   :  { %v1452_v8 = vmul.f32 1.442695, %v1449_v7 }
0x2692   :  { %1863 = vpow2.f32 %v1452_v8 }
0x2698   :  { %v1864_v55 = vpop.eup %1863 }
0x2699   :  { %v1457_v10 = vsel %vm1441_vm11, %v1864_v55, 0.0 }
0x269a   :  { %1458 = vadd.xlane.f32.xlu1 %v1457_v10 }
0x26a0   :  { %v1520_v15 = vpop.permute.xlu0 %1519 }
0x26a1   :  { %v1525_v17 = vsel %vm43_vm5, %v1513_v12, %v1520_v15 }
0x26a2   :  { %1691 = vmatmul.msk.f32.vlgmr.msra.gmra.mxu3 %vm1528_vm0, %v1525_v17 }
0x270d   :  { %v1459_v37 = vpop.xlane.xlu1 %1458 }
0x270e   :  { %1865 = vrcp.f32 %v1459_v37  ;;  %v1486_v13 = vand.u32 2147483648, %v1459_v37  ;;  %v1484_v16 = vand.u32 2147483647, %v1459_v37  ;;  %vm1480_vm2 = vweird.f32 %v1459_v37 }
0x2710   :  { %v1487_v25 = vor.u32 1.1754944e-38, %v1486_v13  ;;  %vm1485_vm6 = vcmp.eq.f32.partialorder %v1484_v16, 8.507059e+37 }
0x2714   :  { %v1866_v9 = vpop.eup %1865 }
0x2715   :  { %v1476_v11 = vmul.f32 %v1866_v9, %v1459_v37  ;;  %vm1481_vm1 = vweird.f32 %v1866_v9 }
0x2716   :  { %vm1482_vm3 = vmor %vm1480_vm2, %vm1481_vm1 }
0x2717   :  { %v1477_v39 = vsub.f32 1.0, %v1476_v11 }
0x2719   :  { %v1478_v40 = vmul.f32 %v1866_v9, %v1477_v39 }
0x271b   :  { %v1479_v42 = vadd.f32 %v1866_v9, %v1478_v40 }
0x271d   :  { %v1483_v43 = vsel %vm1482_vm3, %v1866_v9, %v1479_v42 }
0x271e   :  { %v1488_v44 = vsel %vm1485_vm6, %v1487_v25, %v1483_v43 }
0x271f   :  { %v1489_v45 = vmul.f32 %v1864_v55, %v1488_v44 }
0x2721   :  { %1690 = vmatmul.msk.f32.gmra.mxu2 %vm1441_vm11, %v1489_v45 }
0x2725   :  { %v1552_v46 = vpop.f32.mrf.mxu3 }
0x2726   :  { %v1553_v47 = vadd.f32 %v1713_v38, %v1552_v46 }
0x2728   :  { %1867 = vtanh.f32 %v1553_v47 }
0x272e   :  { %v1868_v48 = vpop.eup %1867 }
0x272f   :  { %1577 = vmatmul.f32.vlgmr.msrb.gmra.mxu0 %v1868_v48 }
0x27a4   :  { %v1516_v14 = vpop.f32.mrf.mxu2 }
0x27a5   :  { %v1526_v50 = vsel %vm43_vm5, %v1516_v14, %v1522_v49 }
0x27a6   :  { %1692 = vmatmul.msk.f32.gmra.mxu3 %vm1528_vm0, %v1526_v50 }
0x27ac   :  { %v1578_v52 = vpop.f32.mrf.mxu0 }
0x27ad   :  { %v1579_v53 = vadd.f32 %v1714_v51, %v1578_v52 }
0x27af   :  { %v1586_v54 = vsel %vm1585_vm7, %v1579_v53, -inf }
0x27b0   :  { %1588 = vmax.xlane.f32.xlu1 %v1586_v54 }
0x2823   :  { %v1589_v24 = vpop.xlane.xlu1 %1588 }
0x2824   :  { %v1592_v57 = vsub.f32 %v1586_v54, %v1589_v24  ;;  %vm1612_vm8 = vcmp.ge.f32.partialorder %v1586_v54, %v1589_v24 }
0x2825   :  { %v1614_v58 = vsel %vm1612_vm8, %v1584_v56, 128.0 }
0x2826   :  { %v1594_v59 = vmul.f32 1.442695, %v1592_v57  ;;  %1616 = vmin.xlane.f32.xlu2 %v1614_v58 }
0x2828   :  { %1869 = vpow2.f32 %v1594_v59 }
0x2829   :  { %v1555_v60 = vpop.f32.mrf.mxu3 }
0x282a   :  { %v1556_v61 = vadd.f32 %v1713_v38, %v1555_v60 }
0x282c   :  { %1871 = vtanh.f32 %v1556_v61 }
0x282e   :  { %v1870_v62 = vpop.eup %1869 }
0x282f   :  { %1598 = vadd.xlane.f32.xlu0 %v1870_v62 }
0x2832   :  { %v1872_v63 = vpop.eup %1871 }
0x2833   :  { %1580 = vmatmul.f32.gmra.mxu0 %v1872_v63 }
0x2899   :  { %v1617_v0 = vpop.xlane.xlu2 %1616 }
0x289a   :  { %vm1693_vm5 = vcmp.lt.s32.totalorder %v1617_v0, 0  ;;  %v1694_v1 = vceil.f32 %v1617_v0  ;;  %v1695_v2 = vfloor.f32 %v1617_v0 }
0x289c   :  { %v1696_v4 = vsel %vm1693_vm5, %v1694_v1, %v1695_v2 }
0x289d   :  { %v1697_v3 = vcvt.f32.s32 %v1696_v4 }
0x289f   :  { %1623 = vst.msk [vmem:[%s2283_s5] sm:$0xff] %vm1622_vm9, %v1697_v3 }
0x28a2   :  { %v1599_v41 = vpop.xlane.xlu0 %1598 }
0x28a3   :  { %1873 = vlog2.f32 %v1599_v41 }
0x28a9   :  { %v1874_v5 = vpop.eup %1873 }
0x28aa   :  { %v1603_v6 = vmul.f32 0.6931472, %v1874_v5 }
0x28ac   :  { %v1606_v7 = vadd.f32 %v1603_v6, %v1589_v24 }
0x28ae   :  { %v1608_v8 = vsub.f32 %v1579_v53, %v1606_v7 }
0x28b0   :  { %1610 = vst [vmem:[#allocation7] sm:$0xff] %v1608_v8  ;;  %v1581_v55 = vpop.f32.mrf.mxu0 }
0x28b1   :  { %v1582_v10 = vadd.f32 %v1714_v51, %v1581_v55 }
0x28b3   :  { %v1587_v12 = vsel %vm1585_vm7, %v1582_v10, -inf }
0x28b4   :  { %1590 = vmax.xlane.f32.xlu1 %v1587_v12 }
0x2927   :  { %v1591_v15 = vpop.xlane.xlu1 %1590 }
0x2928   :  { %v1593_v17 = vsub.f32 %v1587_v12, %v1591_v15  ;;  %vm1613_vm10 = vcmp.ge.f32.partialorder %v1587_v12, %v1591_v15 }
0x2929   :  { %v1615_v20 = vsel %vm1613_vm10, %v1584_v56, 128.0 }
0x292a   :  { %v1596_v18 = vmul.f32 1.442695, %v1593_v17 }
0x292c   :  { %1875 = vpow2.f32 %v1596_v18 }
0x2932   :  { %v1876_v19 = vpop.eup %1875 }
0x2933   :  { %1600 = vadd.xlane.f32.xlu1 %v1876_v19 }
0x293b   :  { %1618 = vmin.xlane.f32.xlu1 %v1615_v20 }
0x29a6   :  { %v1601_v21 = vpop.xlane.xlu1 %1600 }
0x29a7   :  { %1877 = vlog2.f32 %v1601_v21 }
0x29ad   :  { %v1878_v22 = vpop.eup %1877 }
0x29ae   :  { %v1605_v23 = vmul.f32 0.6931472, %v1878_v22  ;;  %v1619_v26 = vpop.xlane.xlu1 %1618 }
0x29af   :  { %vm1698_vm11 = vcmp.lt.s32.totalorder %v1619_v26, 0  ;;  %v1699_v27 = vceil.f32 %v1619_v26  ;;  %v1700_v28 = vfloor.f32 %v1619_v26 }
0x29b0   :  { %v1607_v35 = vadd.f32 %v1605_v23, %v1591_v15 }
0x29b1   :  { %v1701_v29 = vsel %vm1698_vm11, %v1699_v27, %v1700_v28 }
0x29b2   :  { %v1609_v30 = vsub.f32 %v1582_v10, %v1607_v35  ;;  %v1702_v31 = vcvt.f32.s32 %v1701_v29 }
0x29b4   :  { %1611 = vst [vmem:[#allocation7 + $0x8] sm:$0xff] %v1609_v30 }
0x29b5   :  { %1624 = vst.msk [vmem:[%s2283_s5 + $0x8] sm:$0xff] %vm1622_vm9, %v1702_v31 }
0x29b6   :  { %1639 = dma.vmem_to_hbm [thread:$0]  %s1632_s11, 256, %s1634_s14, [#allocation6], %s1932_s23, %s1932_s23, %s1933_s24  }
0x29b7   :  { %1929 = dma.done.wait [#allocation6], 256  }
0x29b8   :  { %1930 = vsyncadd [#allocation6], 4294967040 }
0x29b9   :  { %1650 = vsyncpa [#allocation5], 1 }
0x29ba   :  { %1651 = vsyncpa [#allocation6], 1 }

</bundles_post_ra>
